<compile_context>
chip_gen: v6e
topology: v6e:2x2x1
jax: 0.10.0
libtpu: 0.0.40
codegen_flags: <defaults>
</compile_context>

<pallas_src>
from functools import partial

import numpy as np
import jax
import jax.numpy as jnp
from jax import lax
from jax.experimental import pallas as pl
from jax.experimental.pallas import tpu as pltpu


# --------------------------------------------------------------------------
# In-kernel helpers
# --------------------------------------------------------------------------

def _layernorm_noaffine(x, eps=1e-5):
    mu = jnp.mean(x, axis=-1, keepdims=True)
    var = jnp.mean(jnp.square(x - mu), axis=-1, keepdims=True)
    return (x - mu) * lax.rsqrt(var + eps)


def _layernorm(x, gamma, beta, eps=1e-5):
    return _layernorm_noaffine(x, eps) * gamma + beta


def _softmax_time(s):
    """Softmax over the time axis (axis 0); reciprocal goes to the EUP slot."""
    s = s - jnp.max(s, axis=0, keepdims=True)
    es = jnp.exp(s)
    return es * pl.reciprocal(jnp.sum(es, axis=0, keepdims=True), approx=True)


def _gelu_tanh(h):
    # tanh-approx GELU (see TODO above); tanh goes to the EUP slot.
    c0 = 0.7978845608028654  # sqrt(2/pi)
    return 0.5 * h * (1.0 + jnp.tanh(c0 * (h + 0.044715 * h * h * h)))


def _conv1d_im2col(x2d, w_flat, b, k, im_ref):
    """'same' 1-D conv (padding (k-1)//2) as a single MXU matmul with K = k * d_in.

    x2d:    [T, d_in] f32 activations
    w_flat: [k*d_in, d_out] bf16, row (j*d_in + c) = kernel tap j, input channel c
    b:      [1, d_out] f32
    im_ref: persistent [T, k*d_in] f32 VMEM scratch; its halo (always-zero) regions were
            cleared at layer 0 and only the valid interior is rewritten here.
    """
    if k == 1:
        return jnp.dot(x2d.astype(w_flat.dtype), w_flat,
                       preferred_element_type=jnp.float32) + b
    assert k % 2 == 1, "PyTorch 'same' padding (k-1)//2 only matches odd kernel sizes"
    T, d_in = x2d.shape
    p = (k - 1) // 2
    for j in range(k):
        lo, hi = max(0, p - j), min(T, T + p - j)
        if hi <= lo:
            continue
        src = max(0, j - p)
        im_ref[lo:hi, j * d_in:(j + 1) * d_in] = x2d[src:src + (hi - lo), :]
    return jnp.dot(im_ref[...].astype(w_flat.dtype), w_flat,
                   preferred_element_type=jnp.float32) + b


# --------------------------------------------------------------------------
# Fused decoder-stack kernel (grid = (batch, layer))
# --------------------------------------------------------------------------

def _decoder_stack_kernel(resident,
                          x_ref, mask_ref,
                          wqk_ref, bqk_ref,
                          wql_ref, bql_ref, wkl_ref, bkl_ref,
                          wt_ref, bt_ref,
                          ln2_g_ref, ln2_b_ref,
                          w1_ref, b1_ref, w2_ref, b2_ref,
                          o_ref,
                          act_ref, emat_ref, *conv_scratch):
    T, D = act_ref.shape
    H = wql_ref.shape[1]              # num_attention_heads = d_model // n_head
    S = D // H                        # attention_head_size = n_head
    F = w1_ref.shape[-1]              # conv_filter_size
    k0 = w1_ref.shape[-2] // D
    k1 = w2_ref.shape[-2] // F
    inv_sqrt_head = float(S) ** -0.5

    im1 = im2 = None
    idx = 0
    if k0 > 1:
        im1 = conv_scratch[idx]
        idx += 1
    if k1 > 1:
        im2 = conv_scratch[idx]

    l = pl.program_id(1)
    n_layers = pl.num_programs(1)
    # Resident weights carry the full L axis (index with the layer id); streamed weights
    # carry a single layer slab (index 0).
    li = l if resident else 0

    @pl.when(l == 0)
    def _init():
        # Load this batch row into the resident activation scratch, build the
        # layer-invariant one-hot head-membership matrix E[h, d] = 1 iff d // S == h,
        # and clear the im2col scratches ONCE per batch row (their halos stay zero;
        # only the valid interior is rewritten each layer).
        act_ref[...] = x_ref[0].astype(jnp.float32)
        h_idx = lax.broadcasted_iota(jnp.int32, (H, D), 0)
        d_idx = lax.broadcasted_iota(jnp.int32, (H, D), 1)
        emat_ref[...] = jnp.logical_and(d_idx >= h_idx * S,
                                        d_idx < (h_idx + 1) * S).astype(jnp.float32)
        if im1 is not None:
            im1[...] = jnp.zeros(im1.shape, im1.dtype)
        if im2 is not None:
            im2[...] = jnp.zeros(im2.shape, im2.dtype)

    x = act_ref[...]                                   # [T, D] f32, carried across layers
    mask_f = mask_ref[0]                               # [T, 1], 1.0 == padding
    keep = 1.0 - mask_f
    # Faithful to the reference FastAttention: logits += (1 - mask) * -10000, while the
    # FFTBlock residual uses masked_fill(mask, 0) (multiply by keep) on the same mask.
    attn_add = keep * (-10000.0)                       # [T, 1], broadcast over heads
    e_mat = emat_ref[...]                              # [H, D]

    # -------- PreNorm -> FastAttention -> residual -> masked_fill ----------
    xn = _layernorm_noaffine(x)                        # LN1 affine folded into wqk/bqk
    qk_proj = jnp.dot(xn.astype(jnp.bfloat16), wqk_ref[li],
                      preferred_element_type=jnp.float32) + bqk_ref[li]       # [T, 2D]
    q = qk_proj[:, :D]                                                        # mixed_query
    k = qk_proj[:, D:]                                                        # mixed_key

    q_score = (jnp.dot(q.astype(jnp.bfloat16), wql_ref[...],
                       preferred_element_type=jnp.float32)
               + bql_ref[...]) * inv_sqrt_head + attn_add                     # [T, H]
    qw = _softmax_time(q_score)                                               # [T, H]
    qw_full = jnp.dot(qw, e_mat, preferred_element_type=jnp.float32)          # [T, D]
    pooled_q = jnp.sum(qw_full * q, axis=0, keepdims=True)                    # [1, D]

    qk_mix = k * pooled_q                                                     # [T, D]
    k_score = (jnp.dot(qk_mix.astype(jnp.bfloat16), wkl_ref[...],
                       preferred_element_type=jnp.float32)
               + bkl_ref[...]) * inv_sqrt_head + attn_add
    kw = _softmax_time(k_score)
    kw_full = jnp.dot(kw, e_mat, preferred_element_type=jnp.float32)
    pooled_k = jnp.sum(kw_full * qk_mix, axis=0, keepdims=True)               # [1, D]

    wv = q * pooled_k
    attn_out = (jnp.dot(wv.astype(jnp.bfloat16), wt_ref[li],
                        preferred_element_type=jnp.float32)
                + bt_ref[li] + q)                      # transform(.) + mixed_query_layer
    x = (attn_out + x) * keep                          # residual, then masked_fill(mask, 0)

    # -------- PreNorm -> Conv1d -> GELU -> Conv1d -> residual -> masked_fill --------
    xn2 = _layernorm(x, ln2_g_ref[li], ln2_b_ref[li])
    h = _conv1d_im2col(xn2, w1_ref[li], b1_ref[li], k0, im1)                  # [T, F]
    h = _gelu_tanh(h)
    y = _conv1d_im2col(h, w2_ref[li], b2_ref[li], k1, im2)                    # [T, D]
    x = (y + x) * keep

    @pl.when(l < n_layers - 1)
    def _carry():
        act_ref[...] = x                               # skip redundant store on last layer

    @pl.when(l == n_layers - 1)
    def _store():
        o_ref[0] = x.astype(o_ref.dtype)


# --------------------------------------------------------------------------
# pallas_call wrapper (per-generation VMEM budgeting + weight residency)
# --------------------------------------------------------------------------

def _vmem_capacity_bytes():
    try:
        cap = int(pltpu.get_tpu_info().vmem_capacity_bytes)
        if cap > 0:
            return cap
    except Exception:
        pass
    return 64 * 1024 * 1024   # conservative fallback (v7x-sized)


def fused_decoder_stack(x, mask3, kp):
    """x: [B, T, D] f32; mask3: [B, T, 1] f32 (1.0 == padding); kp: prepared params."""
    B, T, D = x.shape
    L = kp['wt'].shape[0]
    F = kp['w1f'].shape[-1]
    H = kp['wql'].shape[-1]
    k0, k1 = kp['k0'], kp['k1']

    layer_ws = [kp['wqk'], kp['bqk'], kp['wt'], kp['bt'], kp['ln2_g'], kp['ln2_b'],
                kp['w1f'], kp['b1'], kp['w2f'], kp['b2']]
    shared_ws = [kp['wql'], kp['bql'], kp['wkl'], kp['bkl']]

    def nbytes(a):
        return int(a.size) * a.dtype.itemsize

    # ---- per-generation VMEM budgeting (128 MiB v5e/v6e, 64 MiB v7x) ----
    cap = _vmem_capacity_bytes()
    io_block_bytes = 2 * ((T * D + T * 1 + T * D) * 4)        # x + mask + out, dbl-buffered
    scratch_bytes = (T * D + H * D) * 4                       # act carry + e_mat
    if k0 > 1:
        scratch_bytes += T * k0 * D * 4
    if k1 > 1:
        scratch_bytes += T * k1 * F * 4
    shared_bytes = 2 * sum(nbytes(a) for a in shared_ws)
    full_w_bytes = sum(nbytes(a) for a in layer_ws)
    slab_w_bytes = sum(nbytes(a) // a.shape[0] for a in layer_ws)
    fixed_bytes = io_block_bytes + scratch_bytes + shared_bytes

    # Keep the whole bf16 L-layer weight stack resident in VMEM when it fits: kills the
    # per-(batch-row, layer) weight re-stream from HBM. Otherwise stream one layer slab.
    resident = fixed_bytes + 2 * full_w_bytes <= int(0.75 * cap)
    weight_vmem = 2 * (full_w_bytes if resident else slab_w_bytes)
    vmem_limit = int(min(max(fixed_bytes + weight_vmem + (8 << 20), 16 << 20),
                         int(0.95 * cap)))

    def full_spec(a):
        return pl.BlockSpec(a.shape, lambda b, l, n=a.ndim: (0,) * n)

    def layer_spec(a):
        if resident:
            return full_spec(a)                        # DMA'd once, stays in VMEM
        return pl.BlockSpec((1,) + a.shape[1:],
                            lambda b, l, n=a.ndim: (l,) + (0,) * (n - 1))

    in_specs = [pl.BlockSpec((1, T, D), lambda b, l: (b, 0, 0)),   # x (per batch row)
                pl.BlockSpec((1, T, 1), lambda b, l: (b, 0, 0)),   # mask
                layer_spec(kp['wqk']), layer_spec(kp['bqk']),
                full_spec(kp['wql']), full_spec(kp['bql']),        # shared across layers
                full_spec(kp['wkl']), full_spec(kp['bkl']),
                layer_spec(kp['wt']), layer_spec(kp['bt']),
                layer_spec(kp['ln2_g']), layer_spec(kp['ln2_b']),
                layer_spec(kp['w1f']), layer_spec(kp['b1']),
                layer_spec(kp['w2f']), layer_spec(kp['b2'])]

    ins = [x, mask3,
           kp['wqk'], kp['bqk'], kp['wql'], kp['bql'], kp['wkl'], kp['bkl'],
           kp['wt'], kp['bt'], kp['ln2_g'], kp['ln2_b'],
           kp['w1f'], kp['b1'], kp['w2f'], kp['b2']]

    scratch = [pltpu.VMEM((T, D), jnp.float32),        # activation carried across layers
               pltpu.VMEM((H, D), jnp.float32)]        # one-hot head-membership matrix
    if k0 > 1:
        scratch.append(pltpu.VMEM((T, k0 * D), jnp.float32))
    if k1 > 1:
        scratch.append(pltpu.VMEM((T, k1 * F), jnp.float32))

    return pl.pallas_call(
        partial(_decoder_stack_kernel, resident),
        out_shape=jax.ShapeDtypeStruct((B, T, D), x.dtype),
        grid_spec=pltpu.PrefetchScalarGridSpec(
            num_scalar_prefetch=0,
            grid=(B, L),                               # batch parallel, layers sequential
            in_specs=in_specs,
            out_specs=pl.BlockSpec((1, T, D), lambda b, l: (b, 0, 0)),
            scratch_shapes=scratch),
        compiler_params=pltpu.CompilerParams(
            dimension_semantics=("parallel", "arbitrary"),
            vmem_limit_bytes=vmem_limit),
    )(*ins)


# --------------------------------------------------------------------------
# Parameter init (PyTorch-equivalent layout) + host-side kernel prep + forward
# --------------------------------------------------------------------------

def get_sinusoid_encoding_table(n_position, d_hid):
    position = np.arange(n_position)[:, None].astype(np.float64)
    hid = np.arange(d_hid)[None, :]
    angle = position / np.power(10000.0, 2 * (hid // 2) / d_hid)
    table = np.zeros((n_position, d_hid), dtype=np.float64)
    table[:, 0::2] = np.sin(angle[:, 0::2])
    table[:, 1::2] = np.cos(angle[:, 1::2])
    return jnp.asarray(table, dtype=jnp.float32)


def init_params(key, *, d_model, n_layers, n_head, d_inner, kernel_size,
                max_seq_len, init_std=0.02):
    # FastAttention(dim=d_model, dim_head=d_model//n_head, heads=n_head):
    #   num_attention_heads H = d_model // n_head, attention_head_size S = n_head
    H = d_model // n_head
    k0, k1 = kernel_size
    L = n_layers

    def normal(k, shape):
        return init_std * jax.random.normal(k, shape, jnp.float32)

    ks = jax.random.split(key, 7)
    return {
        'ln1_g': jnp.ones((L, d_model), jnp.float32),
        'ln1_b': jnp.zeros((L, d_model), jnp.float32),
        'wq': normal(ks[0], (L, d_model, d_model)),
        'bq': jnp.zeros((L, d_model), jnp.float32),
        'wk': normal(ks[1], (L, d_model, d_model)),
        'bk': jnp.zeros((L, d_model), jnp.float32),
        # to_q_attn_logits / to_k_attn_logits are shared across layers (FFTBlock ties
        # every layer's module to layer 0's) -> store ONE copy, no layer axis.
        'wql': normal(ks[2], (d_model, H)),
        'bql': jnp.zeros((H,), jnp.float32),
        'wkl': normal(ks[3], (d_model, H)),
        'bkl': jnp.zeros((H,), jnp.float32),
        'wt': normal(ks[4], (L, d_model, d_model)),
        'bt': jnp.zeros((L, d_model), jnp.float32),
        'ln2_g': jnp.ones((L, d_model), jnp.float32),
        'ln2_b': jnp.zeros((L, d_model), jnp.float32),
        'w1': normal(ks[5], (L, k0, d_model, d_inner)),   # tap-major conv weight
        'b1': jnp.zeros((L, d_inner), jnp.float32),
        'w2': normal(ks[6], (L, k1, d_inner, d_model)),
        'b2': jnp.zeros((L, d_model), jnp.float32),
        'pos_enc': get_sinusoid_encoding_table(max_seq_len + 1, d_model),
        'k0': k0, 'k1': k1,
    }


def prepare_kernel_params(p):
    """Host-side prep: q|k fusion, LN1 affine fold, bf16 weights, im2col flattening."""
    L, D, _ = p['wq'].shape
    k0, k1 = p['k0'], p['k1']
    F = p['w1'].shape[-1]

    wqk = jnp.concatenate([p['wq'], p['wk']], axis=-1)           # [L, D, 2D]
    bqk = jnp.concatenate([p['bq'], p['bk']], axis=-1)           # [L, 2D]
    # Fold LayerNorm-1 affine into the fused q|k projection (exact algebra):
    #   (norm(x)*g + b) @ W + bias == norm(x) @ (diag(g) W) + (b @ W + bias)
    wqk_f = p['ln1_g'][:, :, None] * wqk
    bqk_f = jnp.einsum('ld,ldo->lo', p['ln1_b'], wqk) + bqk

    bf = jnp.bfloat16
    return {
        'wqk': wqk_f.astype(bf),
        'bqk': bqk_f[:, None, :],                                # [L, 1, 2D] f32
        'wql': p['wql'].astype(bf), 'bql': p['bql'][None, :],
        'wkl': p['wkl'].astype(bf), 'bkl': p['bkl'][None, :],
        'wt': p['wt'].astype(bf), 'bt': p['bt'][:, None, :],
        'ln2_g': p['ln2_g'][:, None, :], 'ln2_b': p['ln2_b'][:, None, :],
        # conv weights pre-flattened for the im2col matmul: row (j*d_in + c)
        'w1f': p['w1'].reshape(L, k0 * D, F).astype(bf),
        'b1': p['b1'][:, None, :],
        'w2f': p['w2'].reshape(L, k1 * F, D).astype(bf),
        'b2': p['b2'][:, None, :],
        'k0': k0, 'k1': k1,
    }


def decoder_forward(enc_seq, mask_bool, kparams, pos_enc, max_seq_len):
    """enc_seq: [B, T, D] float32;  mask_bool: [B, T] bool (True == padding)."""
    B, T, D = enc_seq.shape
    if T > max_seq_len:
        # eval-time path of the reference module for over-long sequences
        x = enc_seq + get_sinusoid_encoding_table(T, D)[None, :, :]
        mask = mask_bool
    else:
        max_len = min(T, max_seq_len)
        x = enc_seq[:, :max_len, :] + pos_enc[None, :max_len, :]
        mask = mask_bool[:, :max_len]
    mask3 = mask.astype(jnp.float32)[:, :, None]       # [B, T, 1]
    out = fused_decoder_stack(x, mask3, kparams)
    return out, mask


# --------------------------------------------------------------------------
# Main
# --------------------------------------------------------------------------

if __name__ == "__main__":
    # small synthetic config (mirrors the config dict the module expects)
    max_seq_len = 16
    d_model = 32          # decoder_hidden
    n_layers = 2          # decoder_layer
    n_head = 4            # decoder_head
    d_inner = 64          # conv_filter_size
    kernel_size = (9, 1)  # conv_kernel_size

    B, T = 2, 8

    key = jax.random.PRNGKey(0)
    k_x, k_p = jax.random.split(key)

    enc_seq = jax.random.normal(k_x, (B, T, d_model), jnp.float32)
    lengths = jnp.array([8, 6], jnp.int32)
    mask = jnp.arange(T)[None, :] >= lengths[:, None]     # True == padding

    params = init_params(k_p, d_model=d_model, n_layers=n_layers, n_head=n_head,
                         d_inner=d_inner, kernel_size=kernel_size,
                         max_seq_len=max_seq_len)
    kparams = prepare_kernel_params(params)

    dec_output, out_mask = decoder_forward(enc_seq, mask, kparams, params['pos_enc'],
                                           max_seq_len)
    jax.block_until_ready(dec_output)

    assert dec_output.shape == (B, T, d_model)
    assert out_mask.shape == (B, T)
    assert bool(jnp.all(jnp.isfinite(dec_output)))
    print("KERNEL_OK")
</pallas_src>

<mosaic_0001>
module attributes {stable_mosaic.version = 11 : i64} {
  func.func @_decoder_stack_kernel(%arg0: i32, %arg1: i32, %arg2: memref<1x8x32xf32, #tpu.memory_space<vmem>>, %arg3: memref<1x8x1xf32, #tpu.memory_space<vmem>>, %arg4: memref<2x32x64xbf16, #tpu.memory_space<vmem>>, %arg5: memref<2x1x64xf32, #tpu.memory_space<vmem>>, %arg6: memref<32x8xbf16, #tpu.memory_space<vmem>>, %arg7: memref<1x8xf32, #tpu.memory_space<vmem>>, %arg8: memref<32x8xbf16, #tpu.memory_space<vmem>>, %arg9: memref<1x8xf32, #tpu.memory_space<vmem>>, %arg10: memref<2x32x32xbf16, #tpu.memory_space<vmem>>, %arg11: memref<2x1x32xf32, #tpu.memory_space<vmem>>, %arg12: memref<2x1x32xf32, #tpu.memory_space<vmem>>, %arg13: memref<2x1x32xf32, #tpu.memory_space<vmem>>, %arg14: memref<2x288x64xbf16, #tpu.memory_space<vmem>>, %arg15: memref<2x1x64xf32, #tpu.memory_space<vmem>>, %arg16: memref<2x64x32xbf16, #tpu.memory_space<vmem>>, %arg17: memref<2x1x32xf32, #tpu.memory_space<vmem>>, %arg18: memref<1x8x32xf32, #tpu.memory_space<vmem>>, %arg19: memref<8x32xf32, #tpu.memory_space<vmem>>, %arg20: memref<8x32xf32, #tpu.memory_space<vmem>>, %arg21: memref<8x288xf32, #tpu.memory_space<vmem>>) attributes {dimension_semantics = [#tpu.dimension_semantics<parallel>, #tpu.dimension_semantics<arbitrary>], iteration_bounds = array<i64: 2, 2>, scalar_prefetch = 0 : i64, scratch_operands = 3 : i64, tpu.core_type = #tpu.core_type<tc>, window_params = [{transform_indices = @transform_0, window_bounds = array<i64: 1, 8, 32>}, {transform_indices = @transform_1, window_bounds = array<i64: 1, 8, 1>}, {pipeline_mode = #tpu.pipeline_mode<synchronous>, transform_indices = @transform_2, window_bounds = array<i64: 2, 32, 64>}, {pipeline_mode = #tpu.pipeline_mode<synchronous>, transform_indices = @transform_3, window_bounds = array<i64: 2, 1, 64>}, {pipeline_mode = #tpu.pipeline_mode<synchronous>, transform_indices = @transform_4, window_bounds = array<i64: 32, 8>}, {pipeline_mode = #tpu.pipeline_mode<synchronous>, transform_indices = @transform_5, window_bounds = array<i64: 1, 8>}, {pipeline_mode = #tpu.pipeline_mode<synchronous>, transform_indices = @transform_6, window_bounds = array<i64: 32, 8>}, {pipeline_mode = #tpu.pipeline_mode<synchronous>, transform_indices = @transform_7, window_bounds = array<i64: 1, 8>}, {pipeline_mode = #tpu.pipeline_mode<synchronous>, transform_indices = @transform_8, window_bounds = array<i64: 2, 32, 32>}, {pipeline_mode = #tpu.pipeline_mode<synchronous>, transform_indices = @transform_9, window_bounds = array<i64: 2, 1, 32>}, {pipeline_mode = #tpu.pipeline_mode<synchronous>, transform_indices = @transform_10, window_bounds = array<i64: 2, 1, 32>}, {pipeline_mode = #tpu.pipeline_mode<synchronous>, transform_indices = @transform_11, window_bounds = array<i64: 2, 1, 32>}, {pipeline_mode = #tpu.pipeline_mode<synchronous>, transform_indices = @transform_12, window_bounds = array<i64: 2, 288, 64>}, {pipeline_mode = #tpu.pipeline_mode<synchronous>, transform_indices = @transform_13, window_bounds = array<i64: 2, 1, 64>}, {pipeline_mode = #tpu.pipeline_mode<synchronous>, transform_indices = @transform_14, window_bounds = array<i64: 2, 64, 32>}, {pipeline_mode = #tpu.pipeline_mode<synchronous>, transform_indices = @transform_15, window_bounds = array<i64: 2, 1, 32>}, {transform_indices = @transform_16, window_bounds = array<i64: 1, 8, 32>}]} {
    %c0_i32 = arith.constant 0 : i32
    %0 = arith.cmpi eq, %arg1, %c0_i32 : i32
    %1 = arith.extui %0 : i1 to i32
    %c0_i32_0 = arith.constant 0 : i32
    %2 = arith.cmpi ne, %1, %c0_i32_0 : i32
    scf.if %2 {
      %c0_77 = arith.constant 0 : index
      %c0_78 = arith.constant 0 : index
      %c0_79 = arith.constant 0 : index
      %195 = vector.load %arg2[%c0_77, %c0_78, %c0_79] : memref<1x8x32xf32, #tpu.memory_space<vmem>>, vector<1x8x32xf32>
      %196 = vector.shape_cast %195 : vector<1x8x32xf32> to vector<8x32xf32>
      %c0_80 = arith.constant 0 : index
      %c0_81 = arith.constant 0 : index
      %197 = vector.load %arg19[%c0_80, %c0_81] : memref<8x32xf32, #tpu.memory_space<vmem>>, vector<8x32xf32>
      tpu.vector_store %arg19[%c0_80, %c0_81], %196 {strides = array<i32>} : memref<8x32xf32, #tpu.memory_space<vmem>>, vector<8x32xf32>,
      %198 = tpu.iota {dimensions = array<i32: 0>} : vector<8x32xi32>
      %199 = tpu.iota {dimensions = array<i32: 1>} : vector<8x32xi32>
      %c4_i32 = arith.constant 4 : i32
      %200 = vector.broadcast %c4_i32 : i32 to vector<8x32xi32>
      %201 = arith.muli %198, %200 : vector<8x32xi32>
      %202 = arith.cmpi sge, %199, %201 : vector<8x32xi32>
      %c1_i32_82 = arith.constant 1 : i32
      %203 = vector.broadcast %c1_i32_82 : i32 to vector<8x32xi32>
      %204 = arith.addi %198, %203 : vector<8x32xi32>
      %c4_i32_83 = arith.constant 4 : i32
      %205 = vector.broadcast %c4_i32_83 : i32 to vector<8x32xi32>
      %206 = arith.muli %204, %205 : vector<8x32xi32>
      %207 = arith.cmpi slt, %199, %206 : vector<8x32xi32>
      %208 = arith.andi %202, %207 : vector<8x32xi1>
      %209 = arith.extui %208 : vector<8x32xi1> to vector<8x32xi32>
      %210 = arith.sitofp %209 : vector<8x32xi32> to vector<8x32xf32>
      %c0_84 = arith.constant 0 : index
      %c0_85 = arith.constant 0 : index
      %211 = vector.load %arg20[%c0_84, %c0_85] : memref<8x32xf32, #tpu.memory_space<vmem>>, vector<8x32xf32>
      tpu.vector_store %arg20[%c0_84, %c0_85], %210 {strides = array<i32>} : memref<8x32xf32, #tpu.memory_space<vmem>>, vector<8x32xf32>,
      %cst_86 = arith.constant 0.000000e+00 : f32
      %212 = vector.broadcast %cst_86 : f32 to vector<8x288xf32>
      %c0_87 = arith.constant 0 : index
      %c0_88 = arith.constant 0 : index
      %213 = vector.load %arg21[%c0_87, %c0_88] : memref<8x288xf32, #tpu.memory_space<vmem>>, vector<8x288xf32>
      tpu.vector_store %arg21[%c0_87, %c0_88], %212 {strides = array<i32>} : memref<8x288xf32, #tpu.memory_space<vmem>>, vector<8x288xf32>,
    } else {
    }
    %c0 = arith.constant 0 : index
    %c0_1 = arith.constant 0 : index
    %3 = vector.load %arg19[%c0, %c0_1] : memref<8x32xf32, #tpu.memory_space<vmem>>, vector<8x32xf32>
    %c0_2 = arith.constant 0 : index
    %c0_3 = arith.constant 0 : index
    %c0_4 = arith.constant 0 : index
    %4 = vector.load %arg3[%c0_2, %c0_3, %c0_4] : memref<1x8x1xf32, #tpu.memory_space<vmem>>, vector<1x8x1xf32>
    %5 = vector.shape_cast %4 : vector<1x8x1xf32> to vector<8x1xf32>
    %cst = arith.constant 1.000000e+00 : f32
    %6 = vector.broadcast %cst : f32 to vector<8x1xf32>
    %7 = arith.subf %6, %5 : vector<8x1xf32>
    %cst_5 = arith.constant -1.000000e+04 : f32
    %8 = vector.broadcast %cst_5 : f32 to vector<8x1xf32>
    %9 = arith.mulf %7, %8 : vector<8x1xf32>
    %c0_6 = arith.constant 0 : index
    %c0_7 = arith.constant 0 : index
    %10 = vector.load %arg20[%c0_6, %c0_7] : memref<8x32xf32, #tpu.memory_space<vmem>>, vector<8x32xf32>
    %cst_8 = arith.constant dense<0.000000e+00> : vector<8xf32>
    %11 = vector.multi_reduction <add>, %3, %cst_8 [1] : vector<8x32xf32> to vector<8xf32>
    %12 = vector.shape_cast %11 : vector<8xf32> to vector<8x1xf32>
    %cst_9 = arith.constant 3.200000e+01 : f32
    %13 = vector.broadcast %cst_9 : f32 to vector<8x1xf32>
    %14 = arith.divf %12, %13 : vector<8x1xf32>
    %15 = vector.broadcast %14 : vector<8x1xf32> to vector<8x32xf32>
    %16 = arith.subf %3, %15 : vector<8x32xf32>
    %17 = arith.mulf %16, %16 : vector<8x32xf32>
    %cst_10 = arith.constant dense<0.000000e+00> : vector<8xf32>
    %18 = vector.multi_reduction <add>, %17, %cst_10 [1] : vector<8x32xf32> to vector<8xf32>
    %19 = vector.shape_cast %18 : vector<8xf32> to vector<8x1xf32>
    %cst_11 = arith.constant 3.200000e+01 : f32
    %20 = vector.broadcast %cst_11 : f32 to vector<8x1xf32>
    %21 = arith.divf %19, %20 : vector<8x1xf32>
    %22 = vector.broadcast %14 : vector<8x1xf32> to vector<8x32xf32>
    %23 = arith.subf %3, %22 : vector<8x32xf32>
    %cst_12 = arith.constant 9.99999974E-6 : f32
    %24 = vector.broadcast %cst_12 : f32 to vector<8x1xf32>
    %25 = arith.addf %21, %24 : vector<8x1xf32>
    %26 = math.rsqrt %25 : vector<8x1xf32>
    %27 = vector.broadcast %26 : vector<8x1xf32> to vector<8x32xf32>
    %28 = arith.mulf %23, %27 : vector<8x32xf32>
    %29 = arith.truncf %28 : vector<8x32xf32> to vector<8x32xbf16>
    %30 = arith.index_cast %arg1 : i32 to index
    %c0_13 = arith.constant 0 : index
    %c0_14 = arith.constant 0 : index
    %31 = vector.load %arg4[%30, %c0_13, %c0_14] : memref<2x32x64xbf16, #tpu.memory_space<vmem>>, vector<1x32x64xbf16>
    %32 = vector.shape_cast %31 : vector<1x32x64xbf16> to vector<32x64xbf16>
    %cst_15 = arith.constant dense<0.000000e+00> : vector<8x64xf32>
    %33 = tpu.matmul %29, %32, %cst_15 {dimension_numbers = #tpu.dot_dimension_numbers<[1], [0], [0], [1], [0, 0, 1, 1], [], []>} : vector<8x32xbf16>, vector<32x64xbf16>, vector<8x64xf32> -> vector<8x64xf32>
    %34 = arith.index_cast %arg1 : i32 to index
    %c0_16 = arith.constant 0 : index
    %c0_17 = arith.constant 0 : index
    %35 = vector.load %arg5[%34, %c0_16, %c0_17] : memref<2x1x64xf32, #tpu.memory_space<vmem>>, vector<1x1x64xf32>
    %36 = vector.shape_cast %35 : vector<1x1x64xf32> to vector<1x64xf32>
    %37 = vector.broadcast %36 : vector<1x64xf32> to vector<8x64xf32>
    %38 = arith.addf %33, %37 : vector<8x64xf32>
    %39 = vector.extract_strided_slice %38 {offsets = [0, 0], sizes = [8, 32], strides = [1, 1]} : vector<8x64xf32> to vector<8x32xf32>
    %40 = vector.extract_strided_slice %38 {offsets = [0, 32], sizes = [8, 32], strides = [1, 1]} : vector<8x64xf32> to vector<8x32xf32>
    %41 = arith.truncf %39 : vector<8x32xf32> to vector<8x32xbf16>
    %c0_18 = arith.constant 0 : index
    %c0_19 = arith.constant 0 : index
    %42 = vector.load %arg6[%c0_18, %c0_19] : memref<32x8xbf16, #tpu.memory_space<vmem>>, vector<32x8xbf16>
    %cst_20 = arith.constant dense<0.000000e+00> : vector<8x8xf32>
    %43 = tpu.matmul %41, %42, %cst_20 {dimension_numbers = #tpu.dot_dimension_numbers<[1], [0], [0], [1], [0, 0, 1, 1], [], []>} : vector<8x32xbf16>, vector<32x8xbf16>, vector<8x8xf32> -> vector<8x8xf32>
    %c0_21 = arith.constant 0 : index
    %c0_22 = arith.constant 0 : index
    %44 = vector.load %arg7[%c0_21, %c0_22] : memref<1x8xf32, #tpu.memory_space<vmem>>, vector<1x8xf32>
    %45 = vector.broadcast %44 : vector<1x8xf32> to vector<8x8xf32>
    %46 = arith.addf %43, %45 : vector<8x8xf32>
    %cst_23 = arith.constant 5.000000e-01 : f32
    %47 = vector.broadcast %cst_23 : f32 to vector<8x8xf32>
    %48 = arith.mulf %46, %47 : vector<8x8xf32>
    %49 = vector.broadcast %9 : vector<8x1xf32> to vector<8x8xf32>
    %50 = arith.addf %48, %49 : vector<8x8xf32>
    %cst_24 = arith.constant dense<0xFF800000> : vector<8xf32>
    %51 = vector.multi_reduction <maximumf>, %50, %cst_24 [0] : vector<8x8xf32> to vector<8xf32>
    %52 = vector.shape_cast %51 : vector<8xf32> to vector<1x8xf32>
    %53 = vector.broadcast %52 : vector<1x8xf32> to vector<8x8xf32>
    %54 = arith.subf %50, %53 : vector<8x8xf32>
    %55 = math.exp %54 : vector<8x8xf32>
    %cst_25 = arith.constant dense<0.000000e+00> : vector<8xf32>
    %56 = vector.multi_reduction <add>, %55, %cst_25 [0] : vector<8x8xf32> to vector<8xf32>
    %57 = vector.shape_cast %56 : vector<8xf32> to vector<1x8xf32>
    %58 = tpu.reciprocal %57 {approx = true} : vector<1x8xf32> -> vector<1x8xf32>
    %59 = vector.broadcast %58 : vector<1x8xf32> to vector<8x8xf32>
    %60 = arith.mulf %55, %59 : vector<8x8xf32>
    %cst_26 = arith.constant dense<0.000000e+00> : vector<8x32xf32>
    %61 = tpu.matmul %60, %10, %cst_26 {dimension_numbers = #tpu.dot_dimension_numbers<[1], [0], [0], [1], [0, 0, 1, 1], [], []>} : vector<8x8xf32>, vector<8x32xf32>, vector<8x32xf32> -> vector<8x32xf32>
    %62 = arith.mulf %61, %39 : vector<8x32xf32>
    %cst_27 = arith.constant dense<0.000000e+00> : vector<32xf32>
    %63 = vector.multi_reduction <add>, %62, %cst_27 [0] : vector<8x32xf32> to vector<32xf32>
    %64 = vector.shape_cast %63 : vector<32xf32> to vector<1x32xf32>
    %65 = vector.broadcast %64 : vector<1x32xf32> to vector<8x32xf32>
    %66 = arith.mulf %40, %65 : vector<8x32xf32>
    %67 = arith.truncf %66 : vector<8x32xf32> to vector<8x32xbf16>
    %c0_28 = arith.constant 0 : index
    %c0_29 = arith.constant 0 : index
    %68 = vector.load %arg8[%c0_28, %c0_29] : memref<32x8xbf16, #tpu.memory_space<vmem>>, vector<32x8xbf16>
    %cst_30 = arith.constant dense<0.000000e+00> : vector<8x8xf32>
    %69 = tpu.matmul %67, %68, %cst_30 {dimension_numbers = #tpu.dot_dimension_numbers<[1], [0], [0], [1], [0, 0, 1, 1], [], []>} : vector<8x32xbf16>, vector<32x8xbf16>, vector<8x8xf32> -> vector<8x8xf32>
    %c0_31 = arith.constant 0 : index
    %c0_32 = arith.constant 0 : index
    %70 = vector.load %arg9[%c0_31, %c0_32] : memref<1x8xf32, #tpu.memory_space<vmem>>, vector<1x8xf32>
    %71 = vector.broadcast %70 : vector<1x8xf32> to vector<8x8xf32>
    %72 = arith.addf %69, %71 : vector<8x8xf32>
    %cst_33 = arith.constant 5.000000e-01 : f32
    %73 = vector.broadcast %cst_33 : f32 to vector<8x8xf32>
    %74 = arith.mulf %72, %73 : vector<8x8xf32>
    %75 = vector.broadcast %9 : vector<8x1xf32> to vector<8x8xf32>
    %76 = arith.addf %74, %75 : vector<8x8xf32>
    %cst_34 = arith.constant dense<0xFF800000> : vector<8xf32>
    %77 = vector.multi_reduction <maximumf>, %76, %cst_34 [0] : vector<8x8xf32> to vector<8xf32>
    %78 = vector.shape_cast %77 : vector<8xf32> to vector<1x8xf32>
    %79 = vector.broadcast %78 : vector<1x8xf32> to vector<8x8xf32>
    %80 = arith.subf %76, %79 : vector<8x8xf32>
    %81 = math.exp %80 : vector<8x8xf32>
    %cst_35 = arith.constant dense<0.000000e+00> : vector<8xf32>
    %82 = vector.multi_reduction <add>, %81, %cst_35 [0] : vector<8x8xf32> to vector<8xf32>
    %83 = vector.shape_cast %82 : vector<8xf32> to vector<1x8xf32>
    %84 = tpu.reciprocal %83 {approx = true} : vector<1x8xf32> -> vector<1x8xf32>
    %85 = vector.broadcast %84 : vector<1x8xf32> to vector<8x8xf32>
    %86 = arith.mulf %81, %85 : vector<8x8xf32>
    %cst_36 = arith.constant dense<0.000000e+00> : vector<8x32xf32>
    %87 = tpu.matmul %86, %10, %cst_36 {dimension_numbers = #tpu.dot_dimension_numbers<[1], [0], [0], [1], [0, 0, 1, 1], [], []>} : vector<8x8xf32>, vector<8x32xf32>, vector<8x32xf32> -> vector<8x32xf32>
    %88 = arith.mulf %87, %66 : vector<8x32xf32>
    %cst_37 = arith.constant dense<0.000000e+00> : vector<32xf32>
    %89 = vector.multi_reduction <add>, %88, %cst_37 [0] : vector<8x32xf32> to vector<32xf32>
    %90 = vector.shape_cast %89 : vector<32xf32> to vector<1x32xf32>
    %91 = vector.broadcast %90 : vector<1x32xf32> to vector<8x32xf32>
    %92 = arith.mulf %39, %91 : vector<8x32xf32>
    %93 = arith.truncf %92 : vector<8x32xf32> to vector<8x32xbf16>
    %94 = arith.index_cast %arg1 : i32 to index
    %c0_38 = arith.constant 0 : index
    %c0_39 = arith.constant 0 : index
    %95 = vector.load %arg10[%94, %c0_38, %c0_39] : memref<2x32x32xbf16, #tpu.memory_space<vmem>>, vector<1x32x32xbf16>
    %96 = vector.shape_cast %95 : vector<1x32x32xbf16> to vector<32x32xbf16>
    %cst_40 = arith.constant dense<0.000000e+00> : vector<8x32xf32>
    %97 = tpu.matmul %93, %96, %cst_40 {dimension_numbers = #tpu.dot_dimension_numbers<[1], [0], [0], [1], [0, 0, 1, 1], [], []>} : vector<8x32xbf16>, vector<32x32xbf16>, vector<8x32xf32> -> vector<8x32xf32>
    %98 = arith.index_cast %arg1 : i32 to index
    %c0_41 = arith.constant 0 : index
    %c0_42 = arith.constant 0 : index
    %99 = vector.load %arg11[%98, %c0_41, %c0_42] : memref<2x1x32xf32, #tpu.memory_space<vmem>>, vector<1x1x32xf32>
    %100 = vector.shape_cast %99 : vector<1x1x32xf32> to vector<1x32xf32>
    %101 = vector.broadcast %100 : vector<1x32xf32> to vector<8x32xf32>
    %102 = arith.addf %97, %101 : vector<8x32xf32>
    %103 = arith.addf %102, %39 : vector<8x32xf32>
    %104 = arith.addf %103, %3 : vector<8x32xf32>
    %105 = vector.broadcast %7 : vector<8x1xf32> to vector<8x32xf32>
    %106 = arith.mulf %104, %105 : vector<8x32xf32>
    %107 = arith.index_cast %arg1 : i32 to index
    %c0_43 = arith.constant 0 : index
    %c0_44 = arith.constant 0 : index
    %108 = vector.load %arg12[%107, %c0_43, %c0_44] : memref<2x1x32xf32, #tpu.memory_space<vmem>>, vector<1x1x32xf32>
    %109 = vector.shape_cast %108 : vector<1x1x32xf32> to vector<1x32xf32>
    %110 = arith.index_cast %arg1 : i32 to index
    %c0_45 = arith.constant 0 : index
    %c0_46 = arith.constant 0 : index
    %111 = vector.load %arg13[%110, %c0_45, %c0_46] : memref<2x1x32xf32, #tpu.memory_space<vmem>>, vector<1x1x32xf32>
    %112 = vector.shape_cast %111 : vector<1x1x32xf32> to vector<1x32xf32>
    %cst_47 = arith.constant dense<0.000000e+00> : vector<8xf32>
    %113 = vector.multi_reduction <add>, %106, %cst_47 [1] : vector<8x32xf32> to vector<8xf32>
    %114 = vector.shape_cast %113 : vector<8xf32> to vector<8x1xf32>
    %cst_48 = arith.constant 3.200000e+01 : f32
    %115 = vector.broadcast %cst_48 : f32 to vector<8x1xf32>
    %116 = arith.divf %114, %115 : vector<8x1xf32>
    %117 = vector.broadcast %116 : vector<8x1xf32> to vector<8x32xf32>
    %118 = arith.subf %106, %117 : vector<8x32xf32>
    %119 = arith.mulf %118, %118 : vector<8x32xf32>
    %cst_49 = arith.constant dense<0.000000e+00> : vector<8xf32>
    %120 = vector.multi_reduction <add>, %119, %cst_49 [1] : vector<8x32xf32> to vector<8xf32>
    %121 = vector.shape_cast %120 : vector<8xf32> to vector<8x1xf32>
    %cst_50 = arith.constant 3.200000e+01 : f32
    %122 = vector.broadcast %cst_50 : f32 to vector<8x1xf32>
    %123 = arith.divf %121, %122 : vector<8x1xf32>
    %124 = vector.broadcast %116 : vector<8x1xf32> to vector<8x32xf32>
    %125 = arith.subf %106, %124 : vector<8x32xf32>
    %cst_51 = arith.constant 9.99999974E-6 : f32
    %126 = vector.broadcast %cst_51 : f32 to vector<8x1xf32>
    %127 = arith.addf %123, %126 : vector<8x1xf32>
    %128 = math.rsqrt %127 : vector<8x1xf32>
    %129 = vector.broadcast %128 : vector<8x1xf32> to vector<8x32xf32>
    %130 = arith.mulf %125, %129 : vector<8x32xf32>
    %131 = vector.broadcast %109 : vector<1x32xf32> to vector<8x32xf32>
    %132 = arith.mulf %130, %131 : vector<8x32xf32>
    %133 = vector.broadcast %112 : vector<1x32xf32> to vector<8x32xf32>
    %134 = arith.addf %132, %133 : vector<8x32xf32>
    %135 = arith.index_cast %arg1 : i32 to index
    %c0_52 = arith.constant 0 : index
    %c0_53 = arith.constant 0 : index
    %136 = vector.load %arg14[%135, %c0_52, %c0_53] : memref<2x288x64xbf16, #tpu.memory_space<vmem>>, vector<1x288x64xbf16>
    %137 = vector.shape_cast %136 : vector<1x288x64xbf16> to vector<288x64xbf16>
    %138 = arith.index_cast %arg1 : i32 to index
    %c0_54 = arith.constant 0 : index
    %c0_55 = arith.constant 0 : index
    %139 = vector.load %arg15[%138, %c0_54, %c0_55] : memref<2x1x64xf32, #tpu.memory_space<vmem>>, vector<1x1x64xf32>
    %140 = vector.shape_cast %139 : vector<1x1x64xf32> to vector<1x64xf32>
    %141 = vector.extract_strided_slice %134 {offsets = [0, 0], sizes = [4, 32], strides = [1, 1]} : vector<8x32xf32> to vector<4x32xf32>
    %c4 = arith.constant 4 : index
    %c0_56 = arith.constant 0 : index
    %142 = vector.load %arg21[%c4, %c0_56] : memref<8x288xf32, #tpu.memory_space<vmem>>, vector<4x32xf32>
    tpu.vector_store %arg21[%c4, %c0_56], %141 {strides = array<i32>} : memref<8x288xf32, #tpu.memory_space<vmem>>, vector<4x32xf32>,
    %143 = vector.extract_strided_slice %134 {offsets = [0, 0], sizes = [5, 32], strides = [1, 1]} : vector<8x32xf32> to vector<5x32xf32>
    %c3 = arith.constant 3 : index
    %c32 = arith.constant 32 : index
    %144 = vector.load %arg21[%c3, %c32] : memref<8x288xf32, #tpu.memory_space<vmem>>, vector<5x32xf32>
    tpu.vector_store %arg21[%c3, %c32], %143 {strides = array<i32>} : memref<8x288xf32, #tpu.memory_space<vmem>>, vector<5x32xf32>,
    %145 = vector.extract_strided_slice %134 {offsets = [0, 0], sizes = [6, 32], strides = [1, 1]} : vector<8x32xf32> to vector<6x32xf32>
    %c2 = arith.constant 2 : index
    %c64 = arith.constant 64 : index
    %146 = vector.load %arg21[%c2, %c64] : memref<8x288xf32, #tpu.memory_space<vmem>>, vector<6x32xf32>
    tpu.vector_store %arg21[%c2, %c64], %145 {strides = array<i32>} : memref<8x288xf32, #tpu.memory_space<vmem>>, vector<6x32xf32>,
    %147 = vector.extract_strided_slice %134 {offsets = [0, 0], sizes = [7, 32], strides = [1, 1]} : vector<8x32xf32> to vector<7x32xf32>
    %c1 = arith.constant 1 : index
    %c96 = arith.constant 96 : index
    %148 = vector.load %arg21[%c1, %c96] : memref<8x288xf32, #tpu.memory_space<vmem>>, vector<7x32xf32>
    tpu.vector_store %arg21[%c1, %c96], %147 {strides = array<i32>} : memref<8x288xf32, #tpu.memory_space<vmem>>, vector<7x32xf32>,
    %c0_57 = arith.constant 0 : index
    %c128 = arith.constant 128 : index
    %149 = vector.load %arg21[%c0_57, %c128] : memref<8x288xf32, #tpu.memory_space<vmem>>, vector<8x32xf32>
    tpu.vector_store %arg21[%c0_57, %c128], %134 {strides = array<i32>} : memref<8x288xf32, #tpu.memory_space<vmem>>, vector<8x32xf32>,
    %150 = vector.extract_strided_slice %134 {offsets = [1, 0], sizes = [7, 32], strides = [1, 1]} : vector<8x32xf32> to vector<7x32xf32>
    %c0_58 = arith.constant 0 : index
    %c160 = arith.constant 160 : index
    %151 = vector.load %arg21[%c0_58, %c160] : memref<8x288xf32, #tpu.memory_space<vmem>>, vector<7x32xf32>
    tpu.vector_store %arg21[%c0_58, %c160], %150 {strides = array<i32>} : memref<8x288xf32, #tpu.memory_space<vmem>>, vector<7x32xf32>,
    %152 = vector.extract_strided_slice %134 {offsets = [2, 0], sizes = [6, 32], strides = [1, 1]} : vector<8x32xf32> to vector<6x32xf32>
    %c0_59 = arith.constant 0 : index
    %c192 = arith.constant 192 : index
    %153 = vector.load %arg21[%c0_59, %c192] : memref<8x288xf32, #tpu.memory_space<vmem>>, vector<6x32xf32>
    tpu.vector_store %arg21[%c0_59, %c192], %152 {strides = array<i32>} : memref<8x288xf32, #tpu.memory_space<vmem>>, vector<6x32xf32>,
    %154 = vector.extract_strided_slice %134 {offsets = [3, 0], sizes = [5, 32], strides = [1, 1]} : vector<8x32xf32> to vector<5x32xf32>
    %c0_60 = arith.constant 0 : index
    %c224 = arith.constant 224 : index
    %155 = vector.load %arg21[%c0_60, %c224] : memref<8x288xf32, #tpu.memory_space<vmem>>, vector<5x32xf32>
    tpu.vector_store %arg21[%c0_60, %c224], %154 {strides = array<i32>} : memref<8x288xf32, #tpu.memory_space<vmem>>, vector<5x32xf32>,
    %156 = vector.extract_strided_slice %134 {offsets = [4, 0], sizes = [4, 32], strides = [1, 1]} : vector<8x32xf32> to vector<4x32xf32>
    %c0_61 = arith.constant 0 : index
    %c256 = arith.constant 256 : index
    %157 = vector.load %arg21[%c0_61, %c256] : memref<8x288xf32, #tpu.memory_space<vmem>>, vector<4x32xf32>
    tpu.vector_store %arg21[%c0_61, %c256], %156 {strides = array<i32>} : memref<8x288xf32, #tpu.memory_space<vmem>>, vector<4x32xf32>,
    %c0_62 = arith.constant 0 : index
    %c0_63 = arith.constant 0 : index
    %158 = vector.load %arg21[%c0_62, %c0_63] : memref<8x288xf32, #tpu.memory_space<vmem>>, vector<8x288xf32>
    %159 = arith.truncf %158 : vector<8x288xf32> to vector<8x288xbf16>
    %cst_64 = arith.constant dense<0.000000e+00> : vector<8x64xf32>
    %160 = tpu.matmul %159, %137, %cst_64 {dimension_numbers = #tpu.dot_dimension_numbers<[1], [0], [0], [1], [0, 0, 1, 1], [], []>} : vector<8x288xbf16>, vector<288x64xbf16>, vector<8x64xf32> -> vector<8x64xf32>
    %161 = vector.broadcast %140 : vector<1x64xf32> to vector<8x64xf32>
    %162 = arith.addf %160, %161 : vector<8x64xf32>
    %cst_65 = arith.constant 5.000000e-01 : f32
    %163 = vector.broadcast %cst_65 : f32 to vector<8x64xf32>
    %164 = arith.mulf %163, %162 : vector<8x64xf32>
    %cst_66 = arith.constant 4.471500e-02 : f32
    %165 = vector.broadcast %cst_66 : f32 to vector<8x64xf32>
    %166 = arith.mulf %165, %162 : vector<8x64xf32>
    %167 = arith.mulf %166, %162 : vector<8x64xf32>
    %168 = arith.mulf %167, %162 : vector<8x64xf32>
    %169 = arith.addf %162, %168 : vector<8x64xf32>
    %cst_67 = arith.constant 0.797884583 : f32
    %170 = vector.broadcast %cst_67 : f32 to vector<8x64xf32>
    %171 = arith.mulf %170, %169 : vector<8x64xf32>
    %172 = math.tanh %171 : vector<8x64xf32>
    %cst_68 = arith.constant 1.000000e+00 : f32
    %173 = vector.broadcast %cst_68 : f32 to vector<8x64xf32>
    %174 = arith.addf %173, %172 : vector<8x64xf32>
    %175 = arith.mulf %164, %174 : vector<8x64xf32>
    %176 = arith.index_cast %arg1 : i32 to index
    %c0_69 = arith.constant 0 : index
    %c0_70 = arith.constant 0 : index
    %177 = vector.load %arg16[%176, %c0_69, %c0_70] : memref<2x64x32xbf16, #tpu.memory_space<vmem>>, vector<1x64x32xbf16>
    %178 = vector.shape_cast %177 : vector<1x64x32xbf16> to vector<64x32xbf16>
    %179 = arith.index_cast %arg1 : i32 to index
    %c0_71 = arith.constant 0 : index
    %c0_72 = arith.constant 0 : index
    %180 = vector.load %arg17[%179, %c0_71, %c0_72] : memref<2x1x32xf32, #tpu.memory_space<vmem>>, vector<1x1x32xf32>
    %181 = vector.shape_cast %180 : vector<1x1x32xf32> to vector<1x32xf32>
    %182 = arith.truncf %175 : vector<8x64xf32> to vector<8x64xbf16>
    %cst_73 = arith.constant dense<0.000000e+00> : vector<8x32xf32>
    %183 = tpu.matmul %182, %178, %cst_73 {dimension_numbers = #tpu.dot_dimension_numbers<[1], [0], [0], [1], [0, 0, 1, 1], [], []>} : vector<8x64xbf16>, vector<64x32xbf16>, vector<8x32xf32> -> vector<8x32xf32>
    %184 = vector.broadcast %181 : vector<1x32xf32> to vector<8x32xf32>
    %185 = arith.addf %183, %184 : vector<8x32xf32>
    %186 = arith.addf %185, %106 : vector<8x32xf32>
    %187 = vector.broadcast %7 : vector<8x1xf32> to vector<8x32xf32>
    %188 = arith.mulf %186, %187 : vector<8x32xf32>
    %c1_i32 = arith.constant 1 : i32
    %189 = arith.cmpi slt, %arg1, %c1_i32 : i32
    %190 = arith.extui %189 : i1 to i32
    %c0_i32_74 = arith.constant 0 : i32
    %191 = arith.cmpi ne, %190, %c0_i32_74 : i32
    scf.if %191 {
      %c0_77 = arith.constant 0 : index
      %c0_78 = arith.constant 0 : index
      %195 = vector.load %arg19[%c0_77, %c0_78] : memref<8x32xf32, #tpu.memory_space<vmem>>, vector<8x32xf32>
      tpu.vector_store %arg19[%c0_77, %c0_78], %188 {strides = array<i32>} : memref<8x32xf32, #tpu.memory_space<vmem>>, vector<8x32xf32>,
    } else {
    }
    %c1_i32_75 = arith.constant 1 : i32
    %192 = arith.cmpi eq, %arg1, %c1_i32_75 : i32
    %193 = arith.extui %192 : i1 to i32
    %c0_i32_76 = arith.constant 0 : i32
    %194 = arith.cmpi ne, %193, %c0_i32_76 : i32
    scf.if %194 {
      %c0_77 = arith.constant 0 : index
      %c0_78 = arith.constant 0 : index
      %c0_79 = arith.constant 0 : index
      %195 = vector.load %arg18[%c0_77, %c0_78, %c0_79] : memref<1x8x32xf32, #tpu.memory_space<vmem>>, vector<1x8x32xf32>
      %196 = vector.shape_cast %195 : vector<1x8x32xf32> to vector<8x32xf32>
      %197 = vector.shape_cast %188 : vector<8x32xf32> to vector<1x8x32xf32>
      tpu.vector_store %arg18[%c0_77, %c0_78, %c0_79], %197 {strides = array<i32>} : memref<1x8x32xf32, #tpu.memory_space<vmem>>, vector<1x8x32xf32>,
    } else {
    }
    return
  }
  func.func @transform_0(%arg0: i32, %arg1: i32) -> (i32, i32, i32) {
    %c0_i32 = arith.constant 0 : i32
    %c0_i32_0 = arith.constant 0 : i32
    %c0_i32_1 = arith.constant 0 : i32
    return %arg0, %c0_i32, %c0_i32_0 : i32, i32, i32
  }
  func.func @transform_1(%arg0: i32, %arg1: i32) -> (i32, i32, i32) {
    %c0_i32 = arith.constant 0 : i32
    %c0_i32_0 = arith.constant 0 : i32
    %c0_i32_1 = arith.constant 0 : i32
    return %arg0, %c0_i32, %c0_i32_0 : i32, i32, i32
  }
  func.func @transform_2(%arg0: i32, %arg1: i32) -> (i32, i32, i32) {
    %c0_i32 = arith.constant 0 : i32
    %c0_i32_0 = arith.constant 0 : i32
    %c0_i32_1 = arith.constant 0 : i32
    %c0_i32_2 = arith.constant 0 : i32
    return %c0_i32, %c0_i32_0, %c0_i32_1 : i32, i32, i32
  }
  func.func @transform_3(%arg0: i32, %arg1: i32) -> (i32, i32, i32) {
    %c0_i32 = arith.constant 0 : i32
    %c0_i32_0 = arith.constant 0 : i32
    %c0_i32_1 = arith.constant 0 : i32
    %c0_i32_2 = arith.constant 0 : i32
    return %c0_i32, %c0_i32_0, %c0_i32_1 : i32, i32, i32
  }
  func.func @transform_4(%arg0: i32, %arg1: i32) -> (i32, i32) {
    %c0_i32 = arith.constant 0 : i32
    %c0_i32_0 = arith.constant 0 : i32
    %c0_i32_1 = arith.constant 0 : i32
    return %c0_i32, %c0_i32_0 : i32, i32
  }
  func.func @transform_5(%arg0: i32, %arg1: i32) -> (i32, i32) {
    %c0_i32 = arith.constant 0 : i32
    %c0_i32_0 = arith.constant 0 : i32
    %c0_i32_1 = arith.constant 0 : i32
    return %c0_i32, %c0_i32_0 : i32, i32
  }
  func.func @transform_6(%arg0: i32, %arg1: i32) -> (i32, i32) {
    %c0_i32 = arith.constant 0 : i32
    %c0_i32_0 = arith.constant 0 : i32
    %c0_i32_1 = arith.constant 0 : i32
    return %c0_i32, %c0_i32_0 : i32, i32
  }
  func.func @transform_7(%arg0: i32, %arg1: i32) -> (i32, i32) {
    %c0_i32 = arith.constant 0 : i32
    %c0_i32_0 = arith.constant 0 : i32
    %c0_i32_1 = arith.constant 0 : i32
    return %c0_i32, %c0_i32_0 : i32, i32
  }
  func.func @transform_8(%arg0: i32, %arg1: i32) -> (i32, i32, i32) {
    %c0_i32 = arith.constant 0 : i32
    %c0_i32_0 = arith.constant 0 : i32
    %c0_i32_1 = arith.constant 0 : i32
    %c0_i32_2 = arith.constant 0 : i32
    return %c0_i32, %c0_i32_0, %c0_i32_1 : i32, i32, i32
  }
  func.func @transform_9(%arg0: i32, %arg1: i32) -> (i32, i32, i32) {
    %c0_i32 = arith.constant 0 : i32
    %c0_i32_0 = arith.constant 0 : i32
    %c0_i32_1 = arith.constant 0 : i32
    %c0_i32_2 = arith.constant 0 : i32
    return %c0_i32, %c0_i32_0, %c0_i32_1 : i32, i32, i32
  }
  func.func @transform_10(%arg0: i32, %arg1: i32) -> (i32, i32, i32) {
    %c0_i32 = arith.constant 0 : i32
    %c0_i32_0 = arith.constant 0 : i32
    %c0_i32_1 = arith.constant 0 : i32
    %c0_i32_2 = arith.constant 0 : i32
    return %c0_i32, %c0_i32_0, %c0_i32_1 : i32, i32, i32
  }
  func.func @transform_11(%arg0: i32, %arg1: i32) -> (i32, i32, i32) {
    %c0_i32 = arith.constant 0 : i32
    %c0_i32_0 = arith.constant 0 : i32
    %c0_i32_1 = arith.constant 0 : i32
    %c0_i32_2 = arith.constant 0 : i32
    return %c0_i32, %c0_i32_0, %c0_i32_1 : i32, i32, i32
  }
  func.func @transform_12(%arg0: i32, %arg1: i32) -> (i32, i32, i32) {
    %c0_i32 = arith.constant 0 : i32
    %c0_i32_0 = arith.constant 0 : i32
    %c0_i32_1 = arith.constant 0 : i32
    %c0_i32_2 = arith.constant 0 : i32
    return %c0_i32, %c0_i32_0, %c0_i32_1 : i32, i32, i32
  }
  func.func @transform_13(%arg0: i32, %arg1: i32) -> (i32, i32, i32) {
    %c0_i32 = arith.constant 0 : i32
    %c0_i32_0 = arith.constant 0 : i32
    %c0_i32_1 = arith.constant 0 : i32
    %c0_i32_2 = arith.constant 0 : i32
    return %c0_i32, %c0_i32_0, %c0_i32_1 : i32, i32, i32
  }
  func.func @transform_14(%arg0: i32, %arg1: i32) -> (i32, i32, i32) {
    %c0_i32 = arith.constant 0 : i32
    %c0_i32_0 = arith.constant 0 : i32
    %c0_i32_1 = arith.constant 0 : i32
    %c0_i32_2 = arith.constant 0 : i32
    return %c0_i32, %c0_i32_0, %c0_i32_1 : i32, i32, i32
  }
  func.func @transform_15(%arg0: i32, %arg1: i32) -> (i32, i32, i32) {
    %c0_i32 = arith.constant 0 : i32
    %c0_i32_0 = arith.constant 0 : i32
    %c0_i32_1 = arith.constant 0 : i32
    %c0_i32_2 = arith.constant 0 : i32
    return %c0_i32, %c0_i32_0, %c0_i32_1 : i32, i32, i32
  }
  func.func @transform_16(%arg0: i32, %arg1: i32) -> (i32, i32, i32) {
    %c0_i32 = arith.constant 0 : i32
    %c0_i32_0 = arith.constant 0 : i32
    %c0_i32_1 = arith.constant 0 : i32
    return %arg0, %c0_i32, %c0_i32_0 : i32, i32, i32
  }
}

</mosaic_0001>

<bundles_post_ra>
// kernel: tpu_custom_call.1
= control target key start
LH: loop header
LB: loop body
LE: loop exit
PB: predicated region body
PF: predicated region fallthrough
CT: control target
= control target key end

     0   :  { %s2440_s0 = inlined_call_operand.vmem [shape: f32[2,8,32], index: 0, kind: input, shape index: {}]   ;;  %s2441_s1 = inlined_call_operand.vmem [shape: f32[2,8,1], index: 1, kind: input, shape index: {}]   ;;  %s2442_s2 = inlined_call_operand.vmem [shape: bf16[2,32,64], index: 2, kind: input, shape index: {}]   ;;  %s2443_s3 = inlined_call_operand.vmem [shape: f32[2,1,64], index: 3, kind: input, shape index: {}]   ;;  %s2444_s4 = inlined_call_operand.vmem [shape: bf16[32,8], index: 4, kind: input, shape index: {}]   ;;  %s2445_s5 = inlined_call_operand.vmem [shape: f32[1,8], index: 5, kind: input, shape index: {}]   ;;  %s2446_s6 = inlined_call_operand.vmem [shape: bf16[32,8], index: 6, kind: input, shape index: {}]   ;;  %s2447_s7 = inlined_call_operand.vmem [shape: f32[1,8], index: 7, kind: input, shape index: {}]   ;;  %s2448_s8 = inlined_call_operand.vmem [shape: bf16[2,32,32], index: 8, kind: input, shape index: {}]   ;;  %s2449_s9 = inlined_call_operand.vmem [shape: f32[2,1,32], index: 9, kind: input, shape index: {}]   ;;  %s2450_s10 = inlined_call_operand.vmem [shape: f32[2,1,32], index: 10, kind: input, shape index: {}]   ;;  %s2451_s11 = inlined_call_operand.vmem [shape: f32[2,1,32], index: 11, kind: input, shape index: {}]   ;;  %s2452_s12 = inlined_call_operand.vmem [shape: bf16[2,288,64], index: 12, kind: input, shape index: {}]   ;;  %s2453_s13 = inlined_call_operand.vmem [shape: f32[2,1,64], index: 13, kind: input, shape index: {}]   ;;  %s2454_s14 = inlined_call_operand.vmem [shape: bf16[2,64,32], index: 14, kind: input, shape index: {}]   ;;  %s2455_s15 = inlined_call_operand.vmem [shape: f32[2,1,32], index: 15, kind: input, shape index: {}]   ;;  %s2456_s16 = inlined_call_operand.hbm [shape: f32[2,8,32], index: 16, kind: output, shape index: {}]  }
   0x1   :  { %2466 = sst [smem:[#allocation17_spill]] %s2440_s0 }
   0x2   :  { %2467 = sst [smem:[#allocation18_spill]] %s2441_s1 }
   0x3   :  { %2468 = sst [smem:[#allocation19_spill]] %s2456_s16 }
   0x4   :  { %21 = vsyncpa [#allocation6], 0 }
   0x5   :  { %23 = vsyncpa [#allocation6 + $0x1], 0  ;;  %s2125_s21 = smov 0   ;;  %s2127_s22 = smov 0  }
   0x6   :  { %s2129_s23 = smov 0   ;;  %s2131_s24 = smov 0  }
   0x7   :  { %s2133_s25 = smov 0   ;;  %s2135_s26 = smov 0  }
   0x8   :  { %s2137_s27 = smov 0   ;;  %s2139_s28 = smov 0  }
   0x9 LB: > { %2469 = sst [smem:[#allocation8_spill]] %s2002_s21  ;;  %s1634_s29 = sadd.s32 4294967295, %s2030_s28   ;;  %s2030_s28 = sphi %s2139_s28, %s29_s28   ;;  %s2026_s27 = sphi %s2137_s27, %s2491_s27   ;;  %s2022_s26 = sphi %s2135_s26, %s2490_s26   ;;  %s2018_s25 = sphi %s2133_s25, %s2494_s25   ;;  %s2014_s24 = sphi %s2131_s24, %s2488_s24   ;;  %s2010_s23 = sphi %s2129_s23, %s2487_s23   ;;  %s2006_s22 = sphi %s2127_s22, %s2493_s22   ;;  %s2002_s21 = sphi %s2125_s21, %s2492_s21  }
   0xa   : > { %2470 = sst [smem:[#allocation9_spill]] %s2010_s23  ;;  %s1635_s30 = sadd.s32 4294967294, %s2030_s28  }
   0xb   : > { %2471 = sst [smem:[#allocation10_spill]] %s2022_s26  ;;  %s38_s0 = sadd.s32 1, %s2022_s26 }
   0xc   : > { %2472 = sst [smem:[#allocation11_spill]] %s2026_s27  ;;  %p39_p0 = scmp.ge.s32.totalorder %s38_s0, 2 }
   0xd   : > { %2473 = sst [smem:[#allocation12_spill]] %s2030_s28  ;;  %s41_s17 = sadd.s32 1, %s2026_s27 }
   0xe   : > { %p404_p1 = scmp.ne.s32.totalorder %s2010_s23, %s2006_s22  ;;  %p405_p2 = scmp.eq.s32.totalorder %s1634_s29, 3 }
   0xf   : > { %s2496_s0 = smov (%p39_p0, %s38_s0), 0  ;;  %s2498_s17 = smov (!%p39_p0, %s41_s17), %s2026_s27 }
  0x10   : > { %2474 = sst [smem:[#allocation13_spill]] %s2496_s0  ;;  %p2174_p3 = por %p405_p2, %p404_p1 }
  0x11   : > { %p410_p4 = scmp.ne.s32.totalorder %s2006_s22, %s2002_s21  ;;  %p43_p5 = scmp.ge.s32.totalorder %s2498_s17, 2 }
  0x12   : > { %p411_p6 = scmp.eq.s32.totalorder %s1635_s30, 3  ;;  %p1638_p7 = scmp.ge.s32.totalorder %s2030_s28, 1 }
  0x13   : > { %p485_p8 = scmp.lt.s32.totalorder %s2030_s28, 5  ;;  %s2500_s17 = smov (%p43_p5, %s2498_s17), 0 }
  0x14   : > { %2476 = sst [smem:[#allocation14_spill]] %s2500_s17  ;;  %p2184_p9 = por %p411_p6, %p410_p4 }
  0x15   : > { %p486_p10 = pnand %p1638_p7, %p485_p8  ;;  %s391_s20 = ssub.s32 %s2026_s27, %s2500_s17 }
  0x16   : > { %s2477_s19 = scalar_select %p2184_p9, 1, 0 }
  0x17   : > { %s394_s29 = sadd.s32 1, %s2010_s23  ;;  %p392_p11 = scmp.eq.s32.totalorder %s391_s20, 0 }
  0x18   : > { %2478 = sst [smem:[#allocation15_spill]] %s2477_s19  ;;  %489 = sbr.rel (%p486_p10) target bundleno = 2839 (0xb17), region = 84 }
  0x19   : > { %s2192_s0 = scalar_select %p392_p11, %s2010_s23, %s394_s29  }
  0x1a   : > { %s535_s30 = sand.u32 (!%p486_p10), 1, %s2006_s22   ;;  %p538_p12 = scmp.lt.s32.totalorder (!%p486_p10), %s2018_s25, 1 }
  0x1b   : > { %2479 = sst [smem:[#allocation16_spill]] %s2192_s0  ;;  %s2198_s26 = sshll.u32 (!%p486_p10), %s535_s30, 3 }
  0x1c   : > { %s2480_s17 = sld [smem:[#allocation17_spill]] (!%p486_p10)  ;;  %s537_s23 = scalar_lea.vmem (!%p486_p10), [#allocation5], %s2198_s26 }
  0x1d   : > { %s539_s21 = scalar_select %p538_p12, %s2018_s25, 1 }
  0x1e   : > { %s2481_s1 = sld [smem:[#allocation18_spill]]  ;;  %p1642_p13 = scmp.ne.s32.totalorder %s2014_s24, 0 }
  0x1f   : > { %s1640_s28 = sshll.u32 %s539_s21, 3 }
  0x20   : > { %550 = sbr.rel (%p1642_p13) target bundleno = 49 (0x31), region = 88 }
  0x22   : > { %s541_s27 = scalar_lea.vmem %s2480_s17, %s1640_s28 }
  0x24   : > { %s2207_s0 = scalar_lea.vmem %s2481_s1, %s1640_s28 }
  0x25   : > { %v551_v0 = vld [vmem:[%s541_s27] sm:$0xff]  ;;  %vm552_vm0 = vcmask 261120   ;;  %v554_v1 = vlaneseq  ;;  %v2032_v2 = vmov 0.0  }
  0x26   : > { %553 = vst.msk [vmem:[#allocation2] sm:$0xff] %vm552_vm0, %v551_v0  ;;  %567 = vst [vmem:[#allocation4] sm:$0xff] %v2032_v2 }
  0x27   : > { %568 = vst [vmem:[#allocation4 + $0x8] sm:$0xff] %v2032_v2  ;;  %569 = vst.msk [vmem:[#allocation4 + $0x10] sm:$0xff] %vm552_vm0, %v2032_v2  ;;  %v555_v3 = vshrl.u32 %v554_v1, 7  ;;  %v557_v4 = vand.u32 127, %v554_v1 }
  0x29   : > { %v558_v5 = vmul.u32 4, %v555_v3  ;;  %v560_v6 = vadd.s32 1, %v555_v3 }
  0x2b   : > { %vm559_vm1 = vcmp.ge.s32.totalorder %v557_v4, %v558_v5  ;;  %v561_v7 = vmul.u32 4, %v560_v6 }
  0x2d   : > { %vm562_vm2 = vcmp.lt.s32.totalorder %v557_v4, %v561_v7 }
  0x2e   : > { %vm563_vm3 = vmand %vm559_vm1, %vm562_vm2 }
  0x2f   : > { %v1643_v8 = vsel %vm563_vm3, 1.0, %v2032_v2 }
  0x30   : > { %566 = vst.msk [vmem:[#allocation3] sm:$0xff] %vm552_vm0, %v1643_v8 }
  0x31 PF: > { %v2214_v9 = vld [vmem:[#allocation2] sm:$0xff]  ;;  %vm575_vm4 = vcmask 261120   ;;  %s1702_s16 = sshll.u32 %s2014_s24, 4  ;;  %v2033_v16 = vmov 0.0   ;;  %vm2034_vm5 = vmmov 0   ;;  %v1896_v19 = vld [vmem:[%s2444_s4 + $0x8] sm:$0xff]   ;;  %s598_s19 = scalar_lea.vmem %s2443_s3, %s2014_s24 }
  0x32   : > { %v576_v10 = vsel %vm575_vm4, %v2214_v9, 0.0  ;;  %1752 = vmatprep.subr.bf16.mxu0 %v2033_v16  ;;  %s593_s28 = scalar_lea.vmem %s2442_s2, %s1702_s16  ;;  %1756 = vmatprep.mubr.msk.bf16.mxu0 %vm2034_vm5, %v2033_v16  ;;  %s2233_s20 = scalar_lea.vmem %s2448_s8, %s1702_s16  ;;  %v1897_v26 = vld [vmem:[%s2444_s4] sm:$0xff]   ;;  %v2035_v28 = vmov 0   ;;  %vm735_vm6 = vcmask 64512   ;;  %vm1210_vm7 = vcmask 257024  }
  0x33   : > { %577 = vadd.xlane.f32.xlu0 %v576_v10  ;;  %v1894_v17 = vld [vmem:[%s593_s28 + $0x8] sm:$0xff]   ;;  %1760 = vmatprep.subr.bf16.mxu1 %v2033_v16  ;;  %v1895_v18 = vld [vmem:[%s593_s28] sm:$0xff]   ;;  %s2036_s17 = smov 32   ;;  %s1025_s16 = scalar_lea.vmem %s2449_s9, %s2014_s24  ;;  %vm1171_vm8 = vcmask 261124   ;;  %vm1196_vm9 = vcmask 522496   ;;  %vm1177_vm10 = vcmask 523523  }
  0x34   : > { %1764 = vmatprep.mubr.msk.bf16.mxu1 %vm2034_vm5, %v2033_v16  ;;  %1753 = vmatpush3.bf16.msra.mxu0 %v1894_v17  ;;  %v2249_v27 = vld [vmem:[%s2207_s0] sm:$0xff]  ;;  %s1704_s27 = smul.u32 144, %s2014_s24  ;;  %s1098_s0 = scalar_lea.vmem %s2451_s11, %s2014_s24  ;;  %vm1202_vm11 = vcmask 783872   ;;  %vm1183_vm12 = vcmask 785922   ;;  %vm1208_vm13 = vcmask 1045248   ;;  %vm1189_vm14 = vcmask 1048321  }
  0x35   : > { %1754 = vmatprep.subr.bf16.mxu0 %v2033_v16  ;;  %1761 = vmatpush3.bf16.msra.mxu1 %v1896_v19  ;;  %v572_v29 = vsub.f32 1.0, %v2249_v27  ;;  %v1646_v31 = vld [vmem:[%s598_s19] ss:$0 sm:$0xff]  ;;  %s2037_s19 = smov 96   ;;  %s1166_s28 = scalar_lea.vmem %s2453_s13, %s2014_s24  ;;  %vm1468_vm15 = vcmask 523264  }
  0x36   : > { %1762 = vmatprep.subr.bf16.mxu1 %v2033_v16  ;;  %1892 = vset.pattern.permute.xlu1 %v2035_v28  ;;  %v1650_v39 = vld [vmem:[%s2445_s5] ss:$0 sm:$0xff]  ;;  %s2331_s29 = scalar_lea.vmem %s2452_s12, %s1704_s27  ;;  %p1696_p0 = scmp.ge.s32.totalorder %s2014_s24, 1 }
  0x37   : > { %1893 = vset.pattern.permute.xlu0 %v2035_v28  ;;  %v573_v30 = vmul.f32 -10000.0, %v572_v29  ;;  %v574_v38 = vld [vmem:[#allocation3] sm:$0xff] }
  0x38   : > { %1755 = vmatpush3.bf16.msra.mxu0 %v1895_v18 }
  0x39   : > { %1768 = vmatprep.subr.mxu0 %v2033_v16  ;;  %1763 = vmatpush3.bf16.msra.mxu1 %v1897_v26 }
  0x3a   : > { %1773 = vmatprep.subr.bf16.mxu1 %v2033_v16  ;;  %731 = vperm.xlu1 %1892, %v573_v30  }
  0xb5   : > { %v2269_v43 = vpop.permute.xlu1 %731 }
  0xbc   : > { %v578_v11 = vpop.xlane.xlu0 %577 }
  0xbd   : > { %v580_v12 = vmul.f32 0.03125, %v578_v11  ;;  %v1898_v11 = vld [vmem:[%s2446_s6 + $0x8] sm:$0xff]  }
  0xbf   : > { %v581_v13 = vsub.f32 %v2214_v9, %v580_v12 }
  0xc1   : > { %v582_v14 = vmul.f32 %v581_v13, %v581_v13 }
  0xc3   : > { %v583_v15 = vsel %vm575_vm4, %v582_v14, 0.0 }
  0xc4   : > { %584 = vadd.xlane.f32.xlu0 %v583_v15 }
 0x14d   : > { %v585_v20 = vpop.xlane.xlu0 %584 }
 0x14e   : > { %v586_v21 = vmul.f32 0.03125, %v585_v20 }
 0x150   : > { %v587_v22 = vadd.f32 1e-05, %v586_v21  ;;  %v1655_v21 = vld [vmem:[%s2447_s7] ss:$0 sm:$0xff] }
 0x152   : > { %1924 = vrsqrt.f32 %v587_v22 }
 0x15f   : > { %v1925_v23 = vpop.eup %1924 }
 0x160   : > { %v589_v24 = vmul.f32 %v1925_v23, %v581_v13  ;;  %v1899_v13 = vld [vmem:[%s2446_s6] sm:$0xff]  }
 0x162   : > { %v590_v25 = vpack.c.bf16 %v589_v24, %v589_v24 }
 0x164   : > { %1757 = vmatmul.mubr.msk.bf16.vlgmr.msra.gmra.mxu0 %vm575_vm4, %v590_v25 }
 0x165   : > { %1770 = vmatprep.mubr.msk.f32.mxu0 %vm2034_vm5, %v2033_v16  ;;  %1769 = vmatpush3.msra.mxu0 %v574_v38 }
 0x166   : > { %1781 = vmatprep.subr.mxu0 %v2033_v16 }
 0x224   : > { %v655_v32 = vpop.f32.mrf.mxu0 }
 0x225   : > { %v2258_v33 = vadd.f32 %v1646_v31, %v655_v32 }
 0x226   : > { %v1758_v34 = vpop.f32.mrf.mxu0 }
 0x227   : > { %v661_v35 = vpack.c.bf16 %v2258_v33, %v2258_v33 }
 0x228   : > { %v658_v36 = vpop.f32.mrf.mxu0 }
 0x229   : > { %1765 = vmatmul.mubr.msk.bf16.vlgmr.msra.gmra.mxu1 %vm575_vm4, %v661_v35 }
 0x22a   : > { %v1759_v37 = vpop.f32.mrf.mxu0  ;;  %1777 = vmatprep.mubr.msk.bf16.mxu1 %vm2034_vm5, %v2033_v16  ;;  %1774 = vmatpush3.bf16.msra.mxu1 %v1898_v11 }
 0x22b   : > { %1775 = vmatprep.subr.bf16.mxu1 %v2033_v16 }
 0x22e   : > { %1776 = vmatpush3.bf16.msra.mxu1 %v1899_v13 }
 0x22f   : > { %1786 = vmatprep.subr.bf16.mxu1 %v2033_v16 }
 0x2e9   : > { %v722_v40 = vpop.f32.mrf.mxu1 }
 0x2ea   : > { %v723_v41 = vadd.f32 %v1650_v39, %v722_v40 }
 0x2eb   : > { %v1766_v42 = vpop.f32.mrf.mxu1 }
 0x2ec   : > { %v728_v44 = vmul.f32 0.5, %v723_v41 }
 0x2ed   : > { %v725_v45 = vpop.f32.mrf.mxu1 }
 0x2ee   : > { %v734_v46 = vadd.f32 %v2269_v43, %v728_v44 }
 0x2ef   : > { %v1767_v47 = vpop.f32.mrf.mxu1 }
 0x2f0   : > { %v736_v48 = vsel %vm735_vm6, %v734_v46, -inf }
 0x2f1   : > { %v737_v49 = vrot.slane %v736_v48, 4 }
 0x2f3   : > { %v738_v50 = vmax.f32 %v736_v48, %v737_v49  ;;  %v1900_v49 = vld [vmem:[%s2233_s20 + $0x8] sm:$0xff]  }
 0x2f5   : > { %v739_v51 = vrot.slane %v738_v50, 2 }
 0x2f7   : > { %v740_v52 = vmax.f32 %v738_v50, %v739_v51  ;;  %v1901_v50 = vld [vmem:[%s2233_s20] sm:$0xff]   ;;  %s2038_s20 = smov 64  }
 0x2f9   : > { %v741_v53 = vrot.slane %v740_v52, 1 }
 0x2fb   : > { %v742_v54 = vmax.f32 %v740_v52, %v741_v53 }
 0x2fd   : > { %v743_v55 = vsub.f32 %v734_v46, %v742_v54 }
 0x2ff   : > { %v744_v56 = vmul.f32 1.442695, %v743_v55 }
 0x301   : > { %1926 = vpow2.f32 %v744_v56 }
 0x30e   : > { %v1927_v57 = vpop.eup %1926 }
 0x30f   : > { %v746_v58 = vsel %vm735_vm6, %v1927_v57, 0.0 }
 0x310   : > { %v747_v59 = vrot.slane %v746_v58, 4 }
 0x312   : > { %v748_v60 = vadd.f32 %v747_v59, %v746_v58 }
 0x314   : > { %v749_v61 = vrot.slane %v748_v60, 2 }
 0x316   : > { %v750_v62 = vadd.f32 %v749_v61, %v748_v60 }
 0x318   : > { %v751_v63 = vrot.slane %v750_v62, 1 }
 0x31a   : > { %v752_v0 = vadd.f32 %v751_v63, %v750_v62 }
 0x31c   : > { %1928 = vrcp.f32 %v752_v0  ;;  %v1661_v0 = vld [vmem:[%s1025_s16] ss:$0 sm:$0xff]  ;;  %s1096_s16 = scalar_lea.vmem %s2450_s10, %s2014_s24 }
 0x329   : > { %v1929_v1 = vpop.eup %1928 }
 0x32a   : > { %v754_v2 = vmul.f32 %v1929_v1, %v1927_v57 }
 0x32c   : > { %1771 = vmatmul.mubr.msk.f32.vlgmr.msra.gmra.mxu0 %vm735_vm6, %v754_v2 }
 0x32d   : > { %1782 = vmatpush3.msra.mxu0 %v574_v38  ;;  %1783 = vmatprep.mubr.msk.f32.mxu0 %vm2034_vm5, %v2033_v16 }
 0x3ec   : > { %v824_v3 = vpop.f32.mrf.mxu0 }
 0x3ed   : > { %v828_v4 = vmul.f32 %v824_v3, %v2258_v33 }
 0x3ee   : > { %v1772_v5 = vpop.f32.mrf.mxu0 }
 0x3ef   : > { %v829_v6 = vsel %vm575_vm4, %v828_v4, 0.0 }
 0x3f0   : > { %v830_v7 = vrot.slane %v829_v6, 4 }
 0x3f2   : > { %v831_v8 = vadd.f32 %v830_v7, %v829_v6 }
 0x3f4   : > { %v832_v10 = vrot.slane %v831_v8, 2 }
 0x3f6   : > { %v833_v12 = vadd.f32 %v832_v10, %v831_v8 }
 0x3f8   : > { %v834_v14 = vrot.slane %v833_v12, 1 }
 0x3fa   : > { %v835_v15 = vadd.f32 %v834_v14, %v833_v12 }
 0x3fc   : > { %837 = vrot.lane.b32.xlu1 %v835_v15, %s2036_s17 }
 0x46e   : > { %v838_v17 = vpop.permute.xlu1 %837 }
 0x46f   : > { %v840_v18 = vmul.f32 %v838_v17, %v2258_v33  ;;  %v1903_v17 = vld [vmem:[%s2331_s29 + $0x80] sm:$0xff]  }
 0x471   : > { %v841_v19 = vpack.c.bf16 %v840_v18, %v840_v18  ;;  %1006 = vrot.lane.b32.xlu1 %v840_v18, %s2037_s19  ;;  %v1904_v18 = vld [vmem:[%s2331_s29 + $0x78] sm:$0xff]  }
 0x472   : > { %1722 = vmatprep.subr.bf16.mxu0 %v1904_v18 }
 0x473   : > { %854 = vrot.lane.b32.xlu0 %v841_v19, %s2037_s19  ;;  %v1905_v19 = vld [vmem:[%s2331_s29 + $0x38] sm:$0xff]  }
 0x475   : > { %1092 = vperm.xlu1 %1892, %v572_v29  }
 0x4e3   : > { %v1007_v51 = vpop.permute.xlu1 %1006 }
 0x4e5   : > { %v855_v20 = vpop.permute.xlu0 %854 }
 0x4e6   : > { %1778 = vmatmul.mubr.msk.bf16.vlgmr.msra.gmra.mxu1 %vm575_vm4, %v855_v20  ;;  %v1906_v20 = vld [vmem:[%s2331_s29 + $0x70] sm:$0xff]  }
 0x4e7   : > { %1790 = vmatprep.mubr.msk.bf16.mxu1 %vm2034_vm5, %v2033_v16  ;;  %1787 = vmatpush3.bf16.msra.mxu1 %v1900_v49 }
 0x4e8   : > { %1788 = vmatprep.subr.bf16.mxu1 %v2033_v16 }
 0x4eb   : > { %1789 = vmatpush3.bf16.msra.mxu1 %v1901_v50  ;;  %v1919_v50 = vld [vmem:[%s2331_s29] sm:$0xff]  }
 0x4ec   : > { %1794 = vmatprep.subr.bf16.mxu1 %v2033_v16 }
 0x4f0   : > { %v2318_v7 = vpop.permute.xlu1 %1092 }
 0x5a6   : > { %v905_v22 = vpop.f32.mrf.mxu1 }
 0x5a7   : > { %v906_v23 = vadd.f32 %v1655_v21, %v905_v22  ;;  %v1907_v21 = vld [vmem:[%s2331_s29 + $0x30] sm:$0xff]  }
 0x5a8   : > { %v1779_v24 = vpop.f32.mrf.mxu1 }
 0x5a9   : > { %v911_v25 = vmul.f32 0.5, %v906_v23 }
 0x5aa   : > { %v908_v26 = vpop.f32.mrf.mxu1 }
 0x5ab   : > { %v912_v28 = vadd.f32 %v911_v25, %v2269_v43  ;;  %v1908_v25 = vld [vmem:[%s2331_s29 + $0x68] sm:$0xff]  }
 0x5ac   : > { %v1780_v30 = vpop.f32.mrf.mxu1  ;;  %v1909_v26 = vld [vmem:[%s2331_s29 + $0x28] sm:$0xff]  }
 0x5ad   : > { %v913_v27 = vsel %vm735_vm6, %v912_v28, -inf  ;;  %v1665_v30 = vld [vmem:[%s1096_s16] ss:$0 sm:$0xff] }
 0x5ae   : > { %v914_v29 = vrot.slane %v913_v27, 4 }
 0x5b0   : > { %v915_v31 = vmax.f32 %v913_v27, %v914_v29  ;;  %v1910_v27 = vld [vmem:[%s2331_s29 + $0x60] sm:$0xff]  }
 0x5b1   : > { %v1911_v29 = vld [vmem:[%s2331_s29 + $0x20] sm:$0xff]  }
 0x5b2   : > { %v916_v32 = vrot.slane %v915_v31, 2 }
 0x5b4   : > { %v917_v34 = vmax.f32 %v915_v31, %v916_v32  ;;  %v1666_v32 = vld [vmem:[%s1098_s0] ss:$0 sm:$0xff] }
 0x5b6   : > { %v918_v35 = vrot.slane %v917_v34, 1 }
 0x5b8   : > { %v919_v36 = vmax.f32 %v917_v34, %v918_v35  ;;  %v1912_v35 = vld [vmem:[%s2331_s29 + $0x58] sm:$0xff]  }
 0x5ba   : > { %v920_v37 = vsub.f32 %v912_v28, %v919_v36  ;;  %v1913_v36 = vld [vmem:[%s2331_s29 + $0x18] sm:$0xff]  }
 0x5bc   : > { %v921_v38 = vmul.f32 1.442695, %v920_v37 }
 0x5be   : > { %1930 = vpow2.f32 %v921_v38 }
 0x5cb   : > { %v1931_v39 = vpop.eup %1930 }
 0x5cc   : > { %v923_v40 = vsel %vm735_vm6, %v1931_v39, 0.0 }
 0x5cd   : > { %v924_v41 = vrot.slane %v923_v40, 4 }
 0x5cf   : > { %v925_v42 = vadd.f32 %v924_v41, %v923_v40  ;;  %v1914_v41 = vld [vmem:[%s2331_s29 + $0x50] sm:$0xff]  }
 0x5d1   : > { %v926_v43 = vrot.slane %v925_v42, 2 }
 0x5d3   : > { %v927_v44 = vadd.f32 %v926_v43, %v925_v42  ;;  %v1915_v42 = vld [vmem:[%s2331_s29 + $0x10] sm:$0xff]  }
 0x5d5   : > { %v928_v45 = vrot.slane %v927_v44, 1 }
 0x5d7   : > { %v929_v46 = vadd.f32 %v928_v45, %v927_v44  ;;  %v1916_v44 = vld [vmem:[%s2331_s29 + $0x48] sm:$0xff]  }
 0x5d8   : > { %v1917_v45 = vld [vmem:[%s2331_s29 + $0x8] sm:$0xff]  }
 0x5d9   : > { %1932 = vrcp.f32 %v929_v46  ;;  %v1918_v46 = vld [vmem:[%s2331_s29 + $0x40] sm:$0xff]  }
 0x5e6   : > { %v1933_v47 = vpop.eup %1932 }
 0x5e7   : > { %v931_v48 = vmul.f32 %v1933_v47, %v1931_v39 }
 0x5e9   : > { %1784 = vmatmul.mubr.msk.f32.vlgmr.msra.gmra.mxu0 %vm735_vm6, %v931_v48 }
 0x5ea   : > { %1723 = vmatpush3.bf16.msra.mxu0 %v1905_v19 }
 0x5eb   : > { %1724 = vmatprep.subr.bf16.mxu0 %v1906_v20 }
 0x5ee   : > { %1725 = vmatpush3.bf16.msra.mxu0 %v1907_v21 }
 0x5ef   : > { %1726 = vmatprep.subr.bf16.mxu0 %v1908_v25 }
 0x5f2   : > { %1727 = vmatpush3.bf16.msra.mxu0 %v1909_v26 }
 0x5f3   : > { %1728 = vmatprep.subr.bf16.mxu0 %v1910_v27 }
 0x5f6   : > { %1729 = vmatpush3.bf16.msra.mxu0 %v1911_v29 }
 0x5f7   : > { %1730 = vmatprep.subr.bf16.mxu0 %v1912_v35 }
 0x5fa   : > { %1731 = vmatpush3.bf16.msra.mxu0 %v1913_v36 }
 0x5fb   : > { %1732 = vmatprep.subr.bf16.mxu0 %v1914_v41 }
 0x5fe   : > { %1733 = vmatpush3.bf16.msra.mxu0 %v1915_v42 }
 0x5ff   : > { %1734 = vmatprep.subr.bf16.mxu0 %v1916_v44 }
 0x602   : > { %1735 = vmatpush3.bf16.msra.mxu0 %v1917_v45 }
 0x603   : > { %1736 = vmatprep.subr.bf16.mxu0 %v1918_v46 }
 0x606   : > { %1737 = vmatpush3.bf16.msra.mxu0 %v1919_v50 }
 0x6a9   : > { %v1001_v52 = vpop.f32.mrf.mxu0 }
 0x6aa   : > { %v1009_v53 = vmul.f32 %v1007_v51, %v1001_v52 }
 0x6ab   : > { %v1785_v54 = vpop.f32.mrf.mxu0 }
 0x6ac   : > { %v1010_v55 = vsel %vm575_vm4, %v1009_v53, 0.0 }
 0x6ad   : > { %v1011_v56 = vrot.slane %v1010_v55, 4 }
 0x6af   : > { %v1012_v57 = vadd.f32 %v1011_v56, %v1010_v55 }
 0x6b1   : > { %v1013_v58 = vrot.slane %v1012_v57, 2 }
 0x6b3   : > { %v1014_v59 = vadd.f32 %v1013_v58, %v1012_v57 }
 0x6b5   : > { %v1015_v60 = vrot.slane %v1014_v59, 1 }
 0x6b7   : > { %v1016_v61 = vadd.f32 %v1015_v60, %v1014_v59 }
 0x6b9   : > { %v1017_v62 = vmul.f32 %v1016_v61, %v2258_v33 }
 0x6bb   : > { %v1018_v63 = vpack.c.bf16 %v1017_v62, %v1017_v62 }
 0x6bd   : > { %1791 = vmatmul.mubr.msk.bf16.vlgmr.msra.gmra.mxu1 %vm575_vm4, %v1018_v63 }
 0x6be   : > { %1798 = vmatprep.mubr.msk.bf16.mxu1 %vm2034_vm5, %v2033_v16 }
 0x77d   : > { %v1082_v1 = vpop.f32.mrf.mxu1 }
 0x77e   : > { %v1083_v2 = vadd.f32 %v1661_v0, %v1082_v1 }
 0x77f   : > { %v1792_v3 = vpop.f32.mrf.mxu1 }
 0x780   : > { %v1088_v4 = vadd.f32 %v1083_v2, %v2258_v33 }
 0x781   : > { %v1085_v5 = vpop.f32.mrf.mxu1 }
 0x782   : > { %v1089_v6 = vadd.f32 %v1088_v4, %v2214_v9  ;;  %v1902_v9 = vld [vmem:[%s2331_s29 + $0x88] sm:$0xff]  }
 0x783   : > { %v1793_v8 = vpop.f32.mrf.mxu1  ;;  %1795 = vmatpush3.bf16.msra.mxu1 %v1902_v9 }
 0x784   : > { %v2321_v10 = vmul.f32 %v2318_v7, %v1089_v6  ;;  %1796 = vmatprep.subr.bf16.mxu1 %v2033_v16 }
 0x786   : > { %v1100_v11 = vsel %vm575_vm4, %v2321_v10, 0.0 }
 0x787   : > { %1101 = vadd.xlane.f32.xlu1 %v1100_v11  ;;  %1797 = vmatpush3.bf16.msra.mxu1 %v1903_v17  ;;  %v1668_v11 = vld [vmem:[%s1166_s28] ss:$0 sm:$0xff] }
 0x788   : > { %1802 = vmatprep.subr.bf16.mxu1 %v2033_v16 }
 0x810   : > { %v1102_v12 = vpop.xlane.xlu1 %1101 }
 0x811   : > { %v1103_v13 = vmul.f32 0.03125, %v1102_v12 }
 0x813   : > { %v1104_v14 = vsub.f32 %v2321_v10, %v1103_v13 }
 0x815   : > { %v1105_v15 = vmul.f32 %v1104_v14, %v1104_v14 }
 0x817   : > { %v1106_v33 = vsel %vm575_vm4, %v1105_v15, 0.0 }
 0x818   : > { %1107 = vadd.xlane.f32.xlu0 %v1106_v33 }
 0x8a1   : > { %v1108_v22 = vpop.xlane.xlu0 %1107 }
 0x8a2   : > { %v1109_v23 = vmul.f32 0.03125, %v1108_v22 }
 0x8a4   : > { %v1110_v24 = vadd.f32 1e-05, %v1109_v23 }
 0x8a6   : > { %1934 = vrsqrt.f32 %v1110_v24 }
 0x8b3   : > { %v1935_v28 = vpop.eup %1934 }
 0x8b4   : > { %v1112_v31 = vmul.f32 %v1935_v28, %v1104_v14 }
 0x8b6   : > { %v1119_v34 = vmul.f32 %v1665_v30, %v1112_v31 }
 0x8b8   : > { %v1126_v37 = vadd.f32 %v1666_v32, %v1119_v34 }
 0x8ba   : > { %1191 = vst.msk [vmem:[#allocation4 + $0x8] sm:$0xff] %vm575_vm4, %v1126_v37  ;;  %v1192_v38 = vrot.slane %v1126_v37, 1  ;;  %v1173_v39 = vrot.slane %v1126_v37, 5  ;;  %v1169_v40 = vrot.slane %v1126_v37, 4  ;;  %v1198_v43 = vrot.slane %v1126_v37, 2 }
 0x8bb   : > { %v1179_v47 = vrot.slane %v1126_v37, 6  ;;  %v1204_v51 = vrot.slane %v1126_v37, 3  ;;  %v1185_v52 = vrot.slane %v1126_v37, 7 }
 0x8bc   : > { %1193 = vrot.lane.b32.xlu1 %v1192_v38, %s2036_s17  ;;  %1174 = vrot.lane.b32.xlu0 %v1173_v39, %s2036_s17  ;;  %1211 = vst.msk [vmem:[#allocation4 + $0x10] sm:$0xf] %vm1210_vm7, %v1169_v40  ;;  %s1705_s17 = sshll.u32 %s2014_s24, 5 }
 0x8bd   : > { %1172 = vst.msk [vmem:[#allocation4] sm:$0xf0] %vm1171_vm8, %v1169_v40  ;;  %s1426_s21 = scalar_lea.vmem %s2454_s14, %s1705_s17  ;;  %s1435_s17 = scalar_lea.vmem %s2455_s15, %s2014_s24 }
 0x8be   : > { %v1920_v3 = vld [vmem:[%s1426_s21 + $0x18] sm:$0xff]   ;;  %v1921_v4 = vld [vmem:[%s1426_s21 + $0x10] sm:$0xff]   ;;  %v1922_v5 = vld [vmem:[%s1426_s21 + $0x8] sm:$0xff]  }
 0x8bf   : > { %v1923_v6 = vld [vmem:[%s1426_s21] sm:$0xff]  }
 0x8c0   : > { %1199 = vrot.lane.b32.xlu1 %v1198_v43, %s2038_s20  ;;  %v1690_v26 = vld [vmem:[%s1435_s17] ss:$0 sm:$0xff] }
 0x8c3   : > { %v1214_v48 = vld [vmem:[#allocation4 + $0x10] sm:$0xff] }
 0x8c4   : > { %1180 = vrot.lane.b32.xlu1 %v1179_v47, %s2038_s20  ;;  %v1217_v49 = vpack.c.bf16 %v1214_v48, %v1214_v48 }
 0x8c6   : > { %1799 = vmatmul.mubr.msk.bf16.vlgmr.msra.gmra.mxu1 %vm575_vm4, %v1217_v49 }
 0x8c7   : > { %1810 = vmatprep.mubr.msk.bf16.mxu1 %vm2034_vm5, %v2033_v16  ;;  %1803 = vmatpush3.bf16.msra.mxu1 %v1920_v3 }
 0x8c8   : > { %1205 = vrot.lane.b32.xlu1 %v1204_v51, %s2037_s19  ;;  %1804 = vmatprep.subr.bf16.mxu1 %v2033_v16 }
 0x8cb   : > { %1805 = vmatpush3.bf16.msra.mxu1 %v1921_v4 }
 0x8cc   : > { %1186 = vrot.lane.b32.xlu1 %v1185_v52, %s2037_s19  ;;  %1806 = vmatprep.subr.bf16.mxu1 %v2033_v16 }
 0x8cf   : > { %1807 = vmatpush3.bf16.msra.mxu1 %v1922_v5 }
 0x8d0   : > { %1808 = vmatprep.subr.bf16.mxu1 %v2033_v16 }
 0x8d3   : > { %1809 = vmatpush3.bf16.msra.mxu1 %v1923_v6 }
 0x92e   : > { %v1194_v53 = vpop.permute.xlu1 %1193  ;;  %v1175_v54 = vpop.permute.xlu0 %1174 }
 0x92f   : > { %1197 = vst.msk [vmem:[#allocation4 + $0x8] sm:$0x7f] %vm1196_vm9, %v1194_v53 }
 0x930   : > { %1178 = vst.msk [vmem:[#allocation4] sm:$0xf8] %vm1177_vm10, %v1175_v54 }
 0x932   : > { %v1200_v55 = vpop.permute.xlu1 %1199 }
 0x933   : > { %1203 = vst.msk [vmem:[#allocation4 + $0x8] sm:$0x3f] %vm1202_vm11, %v1200_v55 }
 0x936   : > { %v1181_v56 = vpop.permute.xlu1 %1180 }
 0x937   : > { %1184 = vst.msk [vmem:[#allocation4] sm:$0xfc] %vm1183_vm12, %v1181_v56 }
 0x93a   : > { %v1206_v57 = vpop.permute.xlu1 %1205 }
 0x93b   : > { %1209 = vst.msk [vmem:[#allocation4 + $0x8] sm:$0x1f] %vm1208_vm13, %v1206_v57 }
 0x93e   : > { %v1187_v58 = vpop.permute.xlu1 %1186 }
 0x93f   : > { %1190 = vst.msk [vmem:[#allocation4] sm:$0xfe] %vm1189_vm14, %v1187_v58 }
 0x942   : > { %v1213_v59 = vld [vmem:[#allocation4 + $0x8] sm:$0xff] }
 0x943   : > { %v1216_v60 = vpack.c.bf16 %v1213_v59, %v1213_v59 }
 0x945   : > { %1367 = vmatprep.mubr.bf16.mxu0 %v1216_v60 }
 0x946   : > { %v1212_v61 = vld [vmem:[#allocation4] sm:$0xff] }
 0x947   : > { %v1215_v62 = vpack.c.bf16 %v1212_v61, %v1212_v61 }
 0x949   : > { %1368 = vmatmul.mubr.bf16.vlgmr.msra.gmra.mxu0 %v1215_v62 }
 0x986   : > { %v1409_v63 = vpop.f32.mrf.mxu1 }
 0x988   : > { %v1800_v0 = vpop.f32.mrf.mxu1 }
 0x98a   : > { %v1412_v1 = vpop.f32.mrf.mxu1 }
 0x98c   : > { %v1801_v2 = vpop.f32.mrf.mxu1 }
 0xa09   : > { %v1738_v8 = vpop.f32.mrf.mxu0 }
 0xa0b   : > { %v1739_v12 = vpop.f32.mrf.mxu0 }
 0xa0c   : > { %v1740_v13 = vadd.f32 %v1739_v12, %v1738_v8 }
 0xa0d   : > { %v1741_v14 = vpop.f32.mrf.mxu0 }
 0xa0e   : > { %v1370_v15 = vadd.f32 %v1740_v13, %v1668_v11 }
 0xa0f   : > { %v1742_v33 = vpop.f32.mrf.mxu0 }
 0xa10   : > { %v1410_v9 = vadd.f32 %v1409_v63, %v1370_v15 }
 0xa12   : > { %v1416_v17 = vmul.f32 0.044715, %v1410_v9  ;;  %v1415_v22 = vmul.f32 0.5, %v1410_v9 }
 0xa14   : > { %v1417_v18 = vmul.f32 %v1416_v17, %v1410_v9 }
 0xa16   : > { %v1418_v19 = vmul.f32 %v1417_v18, %v1410_v9 }
 0xa18   : > { %v1419_v20 = vadd.f32 %v1418_v19, %v1410_v9 }
 0xa1a   : > { %v1420_v21 = vmul.f32 0.7978846, %v1419_v20 }
 0xa1c   : > { %1936 = vtanh.f32 %v1420_v21 }
 0xa29   : > { %v1937_v16 = vpop.eup %1936 }
 0xa2a   : > { %v1422_v23 = vadd.f32 1.0, %v1937_v16 }
 0xa2c   : > { %v1423_v24 = vmul.f32 %v1422_v23, %v1415_v22 }
 0xa2e   : > { %v1437_v25 = vpack.c.bf16 %v1423_v24, %v1423_v24 }
 0xa30   : > { %1811 = vmatmul.mubr.msk.bf16.vlgmr.msra.gmra.mxu1 %vm1468_vm15, %v1437_v25 }
 0xaf0   : > { %v1506_v28 = vpop.f32.mrf.mxu1 }
 0xaf1   : > { %v1507_v30 = vadd.f32 %v1690_v26, %v1506_v28 }
 0xaf2   : > { %v1812_v27 = vpop.f32.mrf.mxu1  ;;  %1517 = sbr.rel (%p1696_p0) target bundleno = 2808 (0xaf8), region = 92 }
 0xaf3   : > { %v1512_v29 = vadd.f32 %v1507_v30, %v2321_v10 }
 0xaf4   : > { %v1509_v31 = vpop.f32.mrf.mxu1 }
 0xaf5   : > { %v1513_v32 = vmul.f32 %v1512_v29, %v2318_v7 }
 0xaf6   : > { %v1813_v34 = vpop.f32.mrf.mxu1 }
 0xaf7   : > { %1518 = vst.msk [vmem:[#allocation2] sm:$0xff] %vm575_vm4, %v1513_v32 }
 0xaf8 PF: > { %p1697_p1 = scmp.ne.s32.totalorder %s2014_s24, 1 }
 0xafa   : > { %1522 = sbr.rel (%p1697_p1) target bundleno = 2816 (0xb00), region = 96 }
 0xaff   : > { %1523 = vst.msk [vmem:[%s537_s23] sm:$0xff] %vm575_vm4, %v1513_v32 }
 0xb00 PF: > { %s1699_s19 = sshll.u32 %s2018_s25, 7  ;;  %s2482_s16 = sld [smem:[#allocation19_spill]] }
 0xb01   : > { %s1538_s28 = sshll.u32 %s537_s23, 4  ;;  %s1525_s24 = scalar_lea.sflag [#allocation6], %s535_s30  ;;  %s1539_s28 = int_to_ptr.vmem [resolvable:$true] %s1538_s28 }
 0xb02   : > { %s1938_s0 = scalar_lea.vmem %s1539_s28, 128  ;;  %s2039_s20 = smov [#allocation5]  }
 0xb03   : > { %p1939_p2 = scmp.ne.s32.totalorder %s1539_s28, %s1938_s0  ;;  %s1942_s17 = sshll.u32 %s2039_s20, 4  ;;  %s1943_s17 = int_to_ptr.vmem [resolvable:$false] %s1942_s17 }
 0xb04   : > { %s1944_s1 = scalar_lea.vmem %s1943_s17, 256  ;;  %p1945_p6 = scmp.lt.s32.totalorder %s1539_s28, %s1943_s17 }
 0xb05   : > { %p1940_p4 = pnand %p1939_p2, %p2174_p3  ;;  %p1946_p7 = scmp.lt.s32.totalorder %s1944_s1, %s1938_s0 }
 0xb06   : > { %s1536_s27 = scalar_lea.hbm %s2482_s16, %s1699_s19 }
 0xb07   : > { %p1941_p5 = pneg %p1940_p4  ;;  %p1947_p8 = por %p1946_p7, %p1945_p6 }
 0xb09   : > { %p1948_p10 = pnand %p1947_p8, %p1941_p5 }
 0xb0b   : > { %1951 = shalt.err (!%p1948_p10)
}
 0xb0c   : > { %s1952_s25 = scalar_lea.hbm %s1536_s27, 128  ;;  %s1956_s30 = scalar_lea.hbm %s2482_s16, 256 }
 0xb0d   : > { %p1953_p11 = scmp.ne.s32.totalorder %s1536_s27, %s1952_s25  ;;  %p1957_p0 = scmp.lt.s32.totalorder %s1536_s27, %s2482_s16 }
 0xb0e   : > { %p1958_p1 = scmp.lt.s32.totalorder %s1956_s30, %s1952_s25 }
 0xb0f   : > { %p1954_p12 = pnand %p1953_p11, %p2174_p3 }
 0xb10   : > { %p1959_p2 = por %p1958_p1, %p1957_p0 }
 0xb11   : > { %p1955_p13 = pneg %p1954_p12 }
 0xb13   : > { %p1960_p4 = pnand %p1959_p2, %p1955_p13 }
 0xb15   : > { %1963 = shalt.err (!%p1960_p4)
}
 0xb16   : > { %1814 = dma.vmem_to_hbm [thread:$0]  (%p2174_p3), %s1539_s28, 128, %s1536_s27, %s1525_s24  }
 0xb17 PF: > { %s2483_s1 = sld [smem:[#allocation12_spill]] }
 0xb18   : > { %s2484_s21 = sld [smem:[#allocation8_spill]] }
 0xb1d   : > { %p1820_p5 = scmp.ge.s32.totalorder %s2483_s1, 2 }
 0xb1e   : > { %s1550_s20 = sand.u32 1, %s2484_s21  }
 0xb1f   : > { %p1817_p6 = pnand %p1820_p5, %p2184_p9  ;;  %s1551_s17 = scalar_lea.sflag [#allocation6], %s1550_s20 }
 0xb21   : > { %p1818_p7 = pneg %p1817_p6 }
 0xb23   : > { %1997 = dma.done.wait (%p1818_p7), %s1551_s17, 128  }
 0xb24   : > { %1999 = vsyncadd (%p1818_p7), %s1551_s17, 4294967168  ;;  %s29_s28 = sadd.s32 1, %s2483_s1   ;;  %s2486_s25 = sld [smem:[#allocation9_spill]] }
 0xb25   : > { %p26_p8 = scmp.ge.s32.totalorder %s29_s28, 6   ;;  %s2487_s23 = sld [smem:[#allocation16_spill]] }
 0xb26   : > { %s2488_s24 = sld [smem:[#allocation10_spill]]  ;;  %s2492_s21 = smov %s2006_s22 }
 0xb27   : > { %s2489_s18 = sld [smem:[#allocation11_spill]] }
 0xb28   : > { %s2490_s26 = sld [smem:[#allocation13_spill]] }
 0xb29   : > { %s2491_s27 = sld [smem:[#allocation14_spill]]  ;;  %28 = sbr.rel (!%p26_p8) target bundleno = 9 (0x9), region = 144 }
 0xb2a   : > { %s2493_s22 = smov %s2486_s25 }
 0xb2d   : > { %s2494_s25 = smov %s2489_s18 }
 0xb2e   :  { %1556 = vsyncpa [#allocation6], 1 }
 0xb2f   :  { %1558 = vsyncpa [#allocation6 + $0x1], 1 }

</bundles_post_ra>
